<compile_context>
chip_gen: v6e
topology: v6e:2x2x1
jax: 0.10.0
libtpu: 0.0.40
codegen_flags: <defaults>
</compile_context>

<pallas_src>
import functools

import jax
import jax.numpy as jnp
from jax.experimental import pallas as pl
from jax.experimental.pallas import tpu as pltpu


def _rup(x, m):
    return (x + m - 1) // m * m


# ----------------------------------------------------------------------------
# Host-side (init-time) weight packing
# ----------------------------------------------------------------------------
def _pack_conv_weight(w_oihw, cin_pad, cout_pad, dtype=jnp.bfloat16):
    """OIHW conv weight -> (kh*kw*cin_pad, cout_pad) fused im2col GEMM weight.

    Row order: tap-major (i*kw + j), then input channel — matching the order
    in which the kernel concatenates its shifted tap views.  Zero-padded so K
    and N are lane aligned.
    """
    cout, cin, kh, kw = w_oihw.shape
    w = jnp.transpose(w_oihw, (2, 3, 1, 0))                 # (kh, kw, cin, cout)
    w = jnp.pad(w, ((0, 0), (0, 0), (0, cin_pad - cin), (0, cout_pad - cout)))
    return w.reshape(kh * kw * cin_pad, cout_pad).astype(dtype)


def _pad_bias(b, cpad):
    return jnp.pad(b, (0, cpad - b.shape[0])).reshape(1, cpad).astype(jnp.float32)


# ----------------------------------------------------------------------------
# The fused encoder kernel (one image per grid step)
# ----------------------------------------------------------------------------
def _make_encoder_kernel(L, H2, W2, PAD):
    """H2 x W2 = final spatial grid (H/4 x W/4); PAD = zero border rows."""
    M2 = H2 * W2
    SLOT = M2 + 2 * PAD            # rows per scratch slot (zero border each side)

    def kernel(*args):
        if L > 0:
            (cols1_ref, w1_ref, b1_ref, w2_ref, b2_ref, w3_ref, b3_ref,
             rw3_ref, rw1_ref, out_ref, ph_ref) = args
        else:
            (cols1_ref, w1_ref, b1_ref, w2_ref, b2_ref, w3_ref, b3_ref,
             out_ref, ph_ref) = args
            rw3_ref = rw1_ref = None

        def mm(a, w):                      # bf16 operands, f32 accumulation
            return jnp.dot(a.astype(jnp.bfloat16), w,
                           preferred_element_type=jnp.float32)

        # Column-wrap masks: a flattened row shift conflates horizontal tap
        # offsets with wrap-around across image rows; rows whose (ow + d)
        # leaves [0, W2) must be zeroed.  Only d in {-1, +1} ever occurs.
        ow = jax.lax.broadcasted_iota(jnp.int32, (M2, 1), 0) % W2
        col_ok = {d: jnp.logical_and(ow + d >= 0, ow + d < W2) for d in (-1, 1)}

        # Zero the padded scratch every step (core-safe when the batch axis is
        # split across TensorCores).  Borders provide the spatial zero padding
        # of every conv; only the interior rows are ever overwritten.
        ph_ref[...] = jnp.zeros_like(ph_ref)

        def tap(slot, qi, qj):
            """(M2, C) view of scratch `slot` shifted by (qi, qj) on the
            H2 x W2 grid, zero outside the image."""
            base = slot * SLOT + PAD + qi * W2 + qj
            blk = ph_ref[pl.ds(base, M2), :]
            if qj == 0:
                return blk
            return jnp.where(col_ok[qj], blk, 0.0)

        # ---- conv1 (k4 s2 p1) + ReLU : one GEMM on the wrapper-built,
        # phase-major im2col rows.  Row layout: p*M2 + u*W2 + v, p = 2r + s,
        # holding conv1 output at spatial position (2u + r, 2v + s).
        a1 = jnp.maximum(mm(cols1_ref[...], w1_ref[...]) + b1_ref[...], 0.0)

        # ---- conv2 (k4 s2 p1) + ReLU : stride-2 gather = static shifts of the
        # four phase blocks of a1; all 16 taps fused into one GEMM (K = 16*C).
        for p in range(4):
            ph_ref[pl.ds(p * SLOT + PAD, M2), :] = a1[p * M2:(p + 1) * M2, :]
        blocks = []
        for i in range(4):                       # row tap: di = i - 1 = 2*qi + r
            qi, r = divmod(i - 1, 2)
            for j in range(4):                   # col tap: dj = j - 1 = 2*qj + s
                qj, s = divmod(j - 1, 2)
                blocks.append(tap(2 * r + s, qi, qj))
        a2 = jnp.maximum(mm(jnp.concatenate(blocks, axis=1), w2_ref[...])
                         + b2_ref[...], 0.0)

        # ---- 3x3 stride-1 im2col via shifted views of scratch slot 0.
        def im2col_3x3(act):
            ph_ref[pl.ds(PAD, M2), :] = act
            blks = [tap(0, di, dj) for di in (-1, 0, 1) for dj in (-1, 0, 1)]
            return jnp.concatenate(blks, axis=1)         # (M2, 9*C)

        # ---- conv3 (k3 s1 p1), no activation.
        x = mm(im2col_3x3(a2), w3_ref[...]) + b3_ref[...]

        # ---- residual stack: x += Conv1x1(ReLU(Conv3x3(ReLU(x))))
        # TODO(synk): for deep stacks switch to lax.fori_loop over the stacked
        # (L, ...) weights to bound live ranges; L is small here, so unroll.
        for l in range(L):
            h = jnp.maximum(x, 0.0)                       # fused pre-ReLU
            h = jnp.maximum(mm(im2col_3x3(h), rw3_ref[l]), 0.0)
            x = x + mm(h, rw1_ref[l])                     # fused residual add

        # final ReLU of the ResidualStack (applies even when L == 0)
        out_ref[...] = jnp.maximum(x, 0.0)

    return kernel


# ----------------------------------------------------------------------------
# Parameter init + one-time layout preparation
# ----------------------------------------------------------------------------
def init_encoder_params(key, in_channels, num_hiddens, num_residual_layers,
                        num_residual_hiddens):
    ks = jax.random.split(key, 6 + 2 * num_residual_layers)
    p = {}
    s = 0.1
    nh2 = num_hiddens // 2
    p["w1"] = s * jax.random.normal(ks[0], (nh2, in_channels, 4, 4), jnp.float32)
    p["b1"] = s * jax.random.normal(ks[1], (nh2,), jnp.float32)
    p["w2"] = s * jax.random.normal(ks[2], (num_hiddens, nh2, 4, 4), jnp.float32)
    p["b2"] = s * jax.random.normal(ks[3], (num_hiddens,), jnp.float32)
    p["w3"] = s * jax.random.normal(ks[4], (num_hiddens, num_hiddens, 3, 3), jnp.float32)
    p["b3"] = s * jax.random.normal(ks[5], (num_hiddens,), jnp.float32)
    p["res_w3"] = []
    p["res_w1"] = []
    for l in range(num_residual_layers):
        p["res_w3"].append(s * jax.random.normal(
            ks[6 + 2 * l], (num_residual_hiddens, num_hiddens, 3, 3), jnp.float32))
        p["res_w1"].append(s * jax.random.normal(
            ks[7 + 2 * l], (num_hiddens, num_residual_hiddens, 1, 1), jnp.float32))
    return p


def prepare_encoder(params):
    """One-time weight re-layout: fused-GEMM packing, 128-lane padding, bf16."""
    nh2, in_channels = params["w1"].shape[0], params["w1"].shape[1]
    nh = params["w2"].shape[0]
    L = len(params["res_w3"])
    nrh = params["res_w3"][0].shape[0] if L else 1

    cpad = _rup(max(nh2, nh, nrh), 128)      # common padded channel width
    cin_pad = _rup(in_channels, 8)           # conv1 per-tap K padding (16*8k = 128k)

    prep = {
        "w1": _pack_conv_weight(params["w1"], cin_pad, cpad),   # (16*cin_pad, cpad)
        "b1": _pad_bias(params["b1"], cpad),
        "w2": _pack_conv_weight(params["w2"], cpad, cpad),      # (16*cpad, cpad)
        "b2": _pad_bias(params["b2"], cpad),
        "w3": _pack_conv_weight(params["w3"], cpad, cpad),      # (9*cpad, cpad)
        "b3": _pad_bias(params["b3"], cpad),
    }
    if L:
        prep["rw3"] = jnp.stack(
            [_pack_conv_weight(w, cpad, cpad) for w in params["res_w3"]])
        prep["rw1"] = jnp.stack(
            [_pack_conv_weight(w, cpad, cpad) for w in params["res_w1"]])
    return prep


# ----------------------------------------------------------------------------
# Wrapper-side conv1 im2col (phase-major rows)
# ----------------------------------------------------------------------------
def _conv1_cols_phase_major(x_nhwc, cin_pad):
    """im2col for conv1 (k4 s2 p1) with rows ordered phase-major so the kernel
    can slice the stride-2 phases conv2 needs with static slices."""
    N, H, W, Cin = x_nhwc.shape
    H1, W1 = H // 2, W // 2
    H2, W2 = H1 // 2, W1 // 2
    xp = jnp.pad(x_nhwc, ((0, 0), (1, 1), (1, 1), (0, cin_pad - Cin)))
    taps = [xp[:, i:i + 2 * H1:2, j:j + 2 * W1:2, :]
            for i in range(4) for j in range(4)]
    cols = jnp.concatenate(taps, axis=-1)                    # (N, H1, W1, 16*cp)
    k1 = 16 * cin_pad
    cols = cols.reshape(N, H2, 2, W2, 2, k1)
    cols = jnp.transpose(cols, (0, 2, 4, 1, 3, 5))           # (N, r, s, u, v, K)
    return cols.reshape(N * 4 * H2 * W2, k1)


# ----------------------------------------------------------------------------
# Forward pass: one pallas_call for the whole encoder
# ----------------------------------------------------------------------------
@functools.partial(jax.jit, static_argnames=("num_hiddens",))
def encoder_forward_pallas(prep, x_nchw, *, num_hiddens):
    x = jnp.transpose(x_nchw, (0, 2, 3, 1)).astype(jnp.float32)      # -> NHWC
    N, H, W, _ = x.shape
    assert H % 4 == 0 and W % 4 == 0
    H2, W2 = H // 4, W // 4
    M2 = H2 * W2
    assert M2 % 8 == 0
    PAD = _rup(W2 + 1, 8)

    cpad = prep["w1"].shape[1]
    k1 = prep["w1"].shape[0]
    cin_pad = k1 // 16
    L = prep["rw1"].shape[0] if "rw1" in prep else 0

    # TODO(synk): fuse conv1's im2col into the kernel for large images (avoid
    # materializing the tap-expanded cols1 in HBM).
    cols1 = _conv1_cols_phase_major(x, cin_pad).astype(jnp.bfloat16)  # (N*4*M2, k1)

    inputs = [cols1, prep["w1"], prep["b1"], prep["w2"], prep["b2"],
              prep["w3"], prep["b3"]]
    in_specs = [
        pl.BlockSpec((4 * M2, k1), lambda b: (b, 0)),     # per-image conv1 cols
        pl.BlockSpec((k1, cpad), lambda b: (0, 0)),       # weights: VMEM resident
        pl.BlockSpec((1, cpad), lambda b: (0, 0)),
        pl.BlockSpec((16 * cpad, cpad), lambda b: (0, 0)),
        pl.BlockSpec((1, cpad), lambda b: (0, 0)),
        pl.BlockSpec((9 * cpad, cpad), lambda b: (0, 0)),
        pl.BlockSpec((1, cpad), lambda b: (0, 0)),
    ]
    if L:
        inputs += [prep["rw3"], prep["rw1"]]
        in_specs += [
            pl.BlockSpec((L, 9 * cpad, cpad), lambda b: (0, 0, 0)),
            pl.BlockSpec((L, cpad, cpad), lambda b: (0, 0, 0)),
        ]

    # Advisory cost estimate (GEMM flops + HBM bytes) for XLA scheduling.
    gemm = [(4 * M2, k1), (M2, 16 * cpad), (M2, 9 * cpad)] \
        + [(M2, 9 * cpad), (M2, cpad)] * L
    flops = 2 * N * sum(m * k * cpad for m, k in gemm)
    bytes_accessed = int(sum(a.size * a.dtype.itemsize for a in inputs)
                         + N * M2 * cpad * 4)

    out_flat = pl.pallas_call(
        _make_encoder_kernel(L, H2, W2, PAD),
        out_shape=jax.ShapeDtypeStruct((N * M2, cpad), jnp.float32),
        grid=(N,),
        in_specs=in_specs,
        out_specs=pl.BlockSpec((M2, cpad), lambda b: (b, 0)),
        scratch_shapes=[pltpu.VMEM((4 * (M2 + 2 * PAD), cpad), jnp.float32)],
        compiler_params=pltpu.CompilerParams(
            dimension_semantics=("parallel",),
            vmem_limit_bytes=32 * 1024 * 1024),
        cost_estimate=pl.CostEstimate(flops=flops, transcendentals=0,
                                      bytes_accessed=bytes_accessed),
    )(*inputs)

    out = out_flat.reshape(N, H2, W2, cpad)[..., :num_hiddens]
    return jnp.transpose(out, (0, 3, 1, 2))                          # -> NCHW


# ----------------------------------------------------------------------------
# Pure-JAX reference (f32, HIGHEST precision) for correctness checking
# ----------------------------------------------------------------------------
def _ref_conv(x_nhwc, w_oihw, bias, stride, pad):
    w_hwio = jnp.transpose(w_oihw, (2, 3, 1, 0))
    out = jax.lax.conv_general_dilated(
        x_nhwc, w_hwio, (stride, stride), [(pad, pad), (pad, pad)],
        dimension_numbers=("NHWC", "HWIO", "NHWC"),
        precision=jax.lax.Precision.HIGHEST)
    if bias is not None:
        out = out + bias
    return out


def encoder_forward_ref(params, x_nhwc, num_residual_layers):
    x = jax.nn.relu(_ref_conv(x_nhwc, params["w1"], params["b1"], 2, 1))
    x = jax.nn.relu(_ref_conv(x, params["w2"], params["b2"], 2, 1))
    x = _ref_conv(x, params["w3"], params["b3"], 1, 1)
    for l in range(num_residual_layers):
        h = jax.nn.relu(x)
        h = _ref_conv(h, params["res_w3"][l], None, 1, 1)
        h = jax.nn.relu(h)
        h = _ref_conv(h, params["res_w1"][l], None, 1, 0)
        x = x + h
    return jax.nn.relu(x)


# ----------------------------------------------------------------------------
if __name__ == "__main__":
    batch, in_channels, H, W = 2, 3, 16, 16
    num_hiddens, num_residual_layers, num_residual_hiddens = 32, 2, 8

    key = jax.random.PRNGKey(0)
    k_params, k_x = jax.random.split(key)
    params = init_encoder_params(k_params, in_channels, num_hiddens,
                                 num_residual_layers, num_residual_hiddens)
    prep = prepare_encoder(params)

    x_nchw = jax.random.normal(k_x, (batch, in_channels, H, W), jnp.float32)

    out_nchw = jax.block_until_ready(
        encoder_forward_pallas(prep, x_nchw, num_hiddens=num_hiddens))

    ref_nhwc = encoder_forward_ref(params, jnp.transpose(x_nchw, (0, 2, 3, 1)),
                                   num_residual_layers)
    ref_nchw = jnp.transpose(ref_nhwc, (0, 3, 1, 2))

    assert out_nchw.shape == (batch, num_hiddens, H // 4, W // 4), out_nchw.shape
    max_err = float(jnp.max(jnp.abs(out_nchw - ref_nchw)))
    # Default (single-pass, bf16-operand) MXU math vs. an f32 HIGHEST reference.
    assert jnp.allclose(out_nchw, ref_nchw, rtol=3e-2, atol=2e-2), max_err

    print("KERNEL_OK")
</pallas_src>

<mosaic_0001>
module attributes {stable_mosaic.version = 11 : i64} {
  func.func @kernel(%arg0: i32, %arg1: memref<64x128xbf16, #tpu.memory_space<vmem>>, %arg2: memref<128x128xbf16, #tpu.memory_space<vmem>>, %arg3: memref<1x128xf32, #tpu.memory_space<vmem>>, %arg4: memref<2048x128xbf16, #tpu.memory_space<vmem>>, %arg5: memref<1x128xf32, #tpu.memory_space<vmem>>, %arg6: memref<1152x128xbf16, #tpu.memory_space<vmem>>, %arg7: memref<1x128xf32, #tpu.memory_space<vmem>>, %arg8: memref<2x1152x128xbf16, #tpu.memory_space<vmem>>, %arg9: memref<2x128x128xbf16, #tpu.memory_space<vmem>>, %arg10: memref<16x128xf32, #tpu.memory_space<vmem>>, %arg11: memref<128x128xf32, #tpu.memory_space<vmem>>) attributes {dimension_semantics = [#tpu.dimension_semantics<parallel>], iteration_bounds = array<i64: 2>, scalar_prefetch = 0 : i64, scratch_operands = 1 : i64, tpu.core_type = #tpu.core_type<tc>, window_params = [{transform_indices = @transform_0, window_bounds = array<i64: 64, 128>}, {pipeline_mode = #tpu.pipeline_mode<synchronous>, transform_indices = @transform_1, window_bounds = array<i64: 128, 128>}, {pipeline_mode = #tpu.pipeline_mode<synchronous>, transform_indices = @transform_2, window_bounds = array<i64: 1, 128>}, {pipeline_mode = #tpu.pipeline_mode<synchronous>, transform_indices = @transform_3, window_bounds = array<i64: 2048, 128>}, {pipeline_mode = #tpu.pipeline_mode<synchronous>, transform_indices = @transform_4, window_bounds = array<i64: 1, 128>}, {pipeline_mode = #tpu.pipeline_mode<synchronous>, transform_indices = @transform_5, window_bounds = array<i64: 1152, 128>}, {pipeline_mode = #tpu.pipeline_mode<synchronous>, transform_indices = @transform_6, window_bounds = array<i64: 1, 128>}, {pipeline_mode = #tpu.pipeline_mode<synchronous>, transform_indices = @transform_7, window_bounds = array<i64: 2, 1152, 128>}, {pipeline_mode = #tpu.pipeline_mode<synchronous>, transform_indices = @transform_8, window_bounds = array<i64: 2, 128, 128>}, {transform_indices = @transform_9, window_bounds = array<i64: 16, 128>}]} {
    %0 = tpu.iota {dimensions = array<i32: 0>} : vector<16x1xi32>
    %c4_i32 = arith.constant 4 : i32
    %c0_i32 = arith.constant 0 : i32
    %1 = arith.cmpi eq, %c4_i32, %c0_i32 : i32
    %c1_i32 = arith.constant 1 : i32
    %2 = arith.select %1, %c1_i32, %c4_i32 : i32
    %3 = vector.broadcast %2 : i32 to vector<16x1xi32>
    %4 = arith.remsi %0, %3 : vector<16x1xi32>
    %c0_i32_0 = arith.constant 0 : i32
    %5 = vector.broadcast %c0_i32_0 : i32 to vector<16x1xi32>
    %6 = arith.cmpi ne, %4, %5 : vector<16x1xi32>
    %c0_i32_1 = arith.constant 0 : i32
    %7 = vector.broadcast %c0_i32_1 : i32 to vector<16x1xi32>
    %8 = arith.cmpi slt, %4, %7 : vector<16x1xi32>
    %c0_i32_2 = arith.constant 0 : i32
    %9 = arith.cmpi slt, %2, %c0_i32_2 : i32
    %10 = vector.broadcast %9 : i1 to vector<16x1xi1>
    %11 = vector.broadcast %10 : vector<16x1xi1> to vector<16x1xi1>
    %12 = arith.xori %8, %11 : vector<16x1xi1>
    %13 = arith.andi %12, %6 : vector<16x1xi1>
    %14 = vector.broadcast %2 : i32 to vector<16x1xi32>
    %15 = arith.addi %4, %14 : vector<16x1xi32>
    %16 = arith.select %13, %15, %4 : vector<16x1xi1>, vector<16x1xi32>
    %c-1_i32 = arith.constant -1 : i32
    %17 = vector.broadcast %c-1_i32 : i32 to vector<16x1xi32>
    %18 = arith.addi %16, %17 : vector<16x1xi32>
    %c0_i32_3 = arith.constant 0 : i32
    %19 = vector.broadcast %c0_i32_3 : i32 to vector<16x1xi32>
    %20 = arith.cmpi sge, %18, %19 : vector<16x1xi32>
    %c-1_i32_4 = arith.constant -1 : i32
    %21 = vector.broadcast %c-1_i32_4 : i32 to vector<16x1xi32>
    %22 = arith.addi %16, %21 : vector<16x1xi32>
    %c4_i32_5 = arith.constant 4 : i32
    %23 = vector.broadcast %c4_i32_5 : i32 to vector<16x1xi32>
    %24 = arith.cmpi slt, %22, %23 : vector<16x1xi32>
    %25 = arith.andi %20, %24 : vector<16x1xi1>
    %c1_i32_6 = arith.constant 1 : i32
    %26 = vector.broadcast %c1_i32_6 : i32 to vector<16x1xi32>
    %27 = arith.addi %16, %26 : vector<16x1xi32>
    %c0_i32_7 = arith.constant 0 : i32
    %28 = vector.broadcast %c0_i32_7 : i32 to vector<16x1xi32>
    %29 = arith.cmpi sge, %27, %28 : vector<16x1xi32>
    %c1_i32_8 = arith.constant 1 : i32
    %30 = vector.broadcast %c1_i32_8 : i32 to vector<16x1xi32>
    %31 = arith.addi %16, %30 : vector<16x1xi32>
    %c4_i32_9 = arith.constant 4 : i32
    %32 = vector.broadcast %c4_i32_9 : i32 to vector<16x1xi32>
    %33 = arith.cmpi slt, %31, %32 : vector<16x1xi32>
    %34 = arith.andi %29, %33 : vector<16x1xi1>
    %cst = arith.constant 0.000000e+00 : f32
    %35 = vector.broadcast %cst : f32 to vector<128x128xf32>
    %c0 = arith.constant 0 : index
    %c0_10 = arith.constant 0 : index
    %36 = vector.load %arg11[%c0, %c0_10] : memref<128x128xf32, #tpu.memory_space<vmem>>, vector<128x128xf32>
    tpu.vector_store %arg11[%c0, %c0_10], %35 {strides = array<i32>} : memref<128x128xf32, #tpu.memory_space<vmem>>, vector<128x128xf32>,
    %c0_11 = arith.constant 0 : index
    %c0_12 = arith.constant 0 : index
    %37 = vector.load %arg1[%c0_11, %c0_12] : memref<64x128xbf16, #tpu.memory_space<vmem>>, vector<64x128xbf16>
    %c0_13 = arith.constant 0 : index
    %c0_14 = arith.constant 0 : index
    %38 = vector.load %arg2[%c0_13, %c0_14] : memref<128x128xbf16, #tpu.memory_space<vmem>>, vector<128x128xbf16>
    %cst_15 = arith.constant dense<0.000000e+00> : vector<64x128xf32>
    %39 = tpu.matmul %37, %38, %cst_15 {dimension_numbers = #tpu.dot_dimension_numbers<[1], [0], [0], [1], [0, 0, 1, 1], [], []>} : vector<64x128xbf16>, vector<128x128xbf16>, vector<64x128xf32> -> vector<64x128xf32>
    %c0_16 = arith.constant 0 : index
    %c0_17 = arith.constant 0 : index
    %40 = vector.load %arg3[%c0_16, %c0_17] : memref<1x128xf32, #tpu.memory_space<vmem>>, vector<1x128xf32>
    %41 = vector.broadcast %40 : vector<1x128xf32> to vector<64x128xf32>
    %42 = arith.addf %39, %41 : vector<64x128xf32>
    %cst_18 = arith.constant 0.000000e+00 : f32
    %43 = vector.broadcast %cst_18 : f32 to vector<64x128xf32>
    %44 = arith.maximumf %42, %43 : vector<64x128xf32>
    %45 = vector.extract_strided_slice %44 {offsets = [0, 0], sizes = [16, 128], strides = [1, 1]} : vector<64x128xf32> to vector<16x128xf32>
    %c8 = arith.constant 8 : index
    %c0_19 = arith.constant 0 : index
    %46 = vector.load %arg11[%c8, %c0_19] : memref<128x128xf32, #tpu.memory_space<vmem>>, vector<16x128xf32>
    tpu.vector_store %arg11[%c8, %c0_19], %45 {strides = array<i32>} : memref<128x128xf32, #tpu.memory_space<vmem>>, vector<16x128xf32>,
    %47 = vector.extract_strided_slice %44 {offsets = [16, 0], sizes = [16, 128], strides = [1, 1]} : vector<64x128xf32> to vector<16x128xf32>
    %c40 = arith.constant 40 : index
    %c0_20 = arith.constant 0 : index
    %48 = vector.load %arg11[%c40, %c0_20] : memref<128x128xf32, #tpu.memory_space<vmem>>, vector<16x128xf32>
    tpu.vector_store %arg11[%c40, %c0_20], %47 {strides = array<i32>} : memref<128x128xf32, #tpu.memory_space<vmem>>, vector<16x128xf32>,
    %49 = vector.extract_strided_slice %44 {offsets = [32, 0], sizes = [16, 128], strides = [1, 1]} : vector<64x128xf32> to vector<16x128xf32>
    %c72 = arith.constant 72 : index
    %c0_21 = arith.constant 0 : index
    %50 = vector.load %arg11[%c72, %c0_21] : memref<128x128xf32, #tpu.memory_space<vmem>>, vector<16x128xf32>
    tpu.vector_store %arg11[%c72, %c0_21], %49 {strides = array<i32>} : memref<128x128xf32, #tpu.memory_space<vmem>>, vector<16x128xf32>,
    %51 = vector.extract_strided_slice %44 {offsets = [48, 0], sizes = [16, 128], strides = [1, 1]} : vector<64x128xf32> to vector<16x128xf32>
    %c104 = arith.constant 104 : index
    %c0_22 = arith.constant 0 : index
    %52 = vector.load %arg11[%c104, %c0_22] : memref<128x128xf32, #tpu.memory_space<vmem>>, vector<16x128xf32>
    tpu.vector_store %arg11[%c104, %c0_22], %51 {strides = array<i32>} : memref<128x128xf32, #tpu.memory_space<vmem>>, vector<16x128xf32>,
    %c99 = arith.constant 99 : index
    %c0_23 = arith.constant 0 : index
    %53 = vector.load %arg11[%c99, %c0_23] : memref<128x128xf32, #tpu.memory_space<vmem>>, vector<16x128xf32>
    %cst_24 = arith.constant 0.000000e+00 : f32
    %54 = vector.shape_cast %25 : vector<16x1xi1> to vector<16x1xi1>
    %55 = vector.broadcast %54 : vector<16x1xi1> to vector<16x128xi1>
    %56 = vector.broadcast %cst_24 : f32 to vector<16x128xf32>
    %57 = arith.select %55, %53, %56 : vector<16x128xi1>, vector<16x128xf32>
    %c68 = arith.constant 68 : index
    %c0_25 = arith.constant 0 : index
    %58 = vector.load %arg11[%c68, %c0_25] : memref<128x128xf32, #tpu.memory_space<vmem>>, vector<16x128xf32>
    %c100 = arith.constant 100 : index
    %c0_26 = arith.constant 0 : index
    %59 = vector.load %arg11[%c100, %c0_26] : memref<128x128xf32, #tpu.memory_space<vmem>>, vector<16x128xf32>
    %c69 = arith.constant 69 : index
    %c0_27 = arith.constant 0 : index
    %60 = vector.load %arg11[%c69, %c0_27] : memref<128x128xf32, #tpu.memory_space<vmem>>, vector<16x128xf32>
    %cst_28 = arith.constant 0.000000e+00 : f32
    %61 = vector.shape_cast %34 : vector<16x1xi1> to vector<16x1xi1>
    %62 = vector.broadcast %61 : vector<16x1xi1> to vector<16x128xi1>
    %63 = vector.broadcast %cst_28 : f32 to vector<16x128xf32>
    %64 = arith.select %62, %60, %63 : vector<16x128xi1>, vector<16x128xf32>
    %c39 = arith.constant 39 : index
    %c0_29 = arith.constant 0 : index
    %65 = vector.load %arg11[%c39, %c0_29] : memref<128x128xf32, #tpu.memory_space<vmem>>, vector<16x128xf32>
    %cst_30 = arith.constant 0.000000e+00 : f32
    %66 = vector.shape_cast %25 : vector<16x1xi1> to vector<16x1xi1>
    %67 = vector.broadcast %66 : vector<16x1xi1> to vector<16x128xi1>
    %68 = vector.broadcast %cst_30 : f32 to vector<16x128xf32>
    %69 = arith.select %67, %65, %68 : vector<16x128xi1>, vector<16x128xf32>
    %c8_31 = arith.constant 8 : index
    %c0_32 = arith.constant 0 : index
    %70 = vector.load %arg11[%c8_31, %c0_32] : memref<128x128xf32, #tpu.memory_space<vmem>>, vector<16x128xf32>
    %c40_33 = arith.constant 40 : index
    %c0_34 = arith.constant 0 : index
    %71 = vector.load %arg11[%c40_33, %c0_34] : memref<128x128xf32, #tpu.memory_space<vmem>>, vector<16x128xf32>
    %c9 = arith.constant 9 : index
    %c0_35 = arith.constant 0 : index
    %72 = vector.load %arg11[%c9, %c0_35] : memref<128x128xf32, #tpu.memory_space<vmem>>, vector<16x128xf32>
    %cst_36 = arith.constant 0.000000e+00 : f32
    %73 = vector.shape_cast %34 : vector<16x1xi1> to vector<16x1xi1>
    %74 = vector.broadcast %73 : vector<16x1xi1> to vector<16x128xi1>
    %75 = vector.broadcast %cst_36 : f32 to vector<16x128xf32>
    %76 = arith.select %74, %72, %75 : vector<16x128xi1>, vector<16x128xf32>
    %c103 = arith.constant 103 : index
    %c0_37 = arith.constant 0 : index
    %77 = vector.load %arg11[%c103, %c0_37] : memref<128x128xf32, #tpu.memory_space<vmem>>, vector<16x128xf32>
    %cst_38 = arith.constant 0.000000e+00 : f32
    %78 = vector.shape_cast %25 : vector<16x1xi1> to vector<16x1xi1>
    %79 = vector.broadcast %78 : vector<16x1xi1> to vector<16x128xi1>
    %80 = vector.broadcast %cst_38 : f32 to vector<16x128xf32>
    %81 = arith.select %79, %77, %80 : vector<16x128xi1>, vector<16x128xf32>
    %c72_39 = arith.constant 72 : index
    %c0_40 = arith.constant 0 : index
    %82 = vector.load %arg11[%c72_39, %c0_40] : memref<128x128xf32, #tpu.memory_space<vmem>>, vector<16x128xf32>
    %c104_41 = arith.constant 104 : index
    %c0_42 = arith.constant 0 : index
    %83 = vector.load %arg11[%c104_41, %c0_42] : memref<128x128xf32, #tpu.memory_space<vmem>>, vector<16x128xf32>
    %c73 = arith.constant 73 : index
    %c0_43 = arith.constant 0 : index
    %84 = vector.load %arg11[%c73, %c0_43] : memref<128x128xf32, #tpu.memory_space<vmem>>, vector<16x128xf32>
    %cst_44 = arith.constant 0.000000e+00 : f32
    %85 = vector.shape_cast %34 : vector<16x1xi1> to vector<16x1xi1>
    %86 = vector.broadcast %85 : vector<16x1xi1> to vector<16x128xi1>
    %87 = vector.broadcast %cst_44 : f32 to vector<16x128xf32>
    %88 = arith.select %86, %84, %87 : vector<16x128xi1>, vector<16x128xf32>
    %c43 = arith.constant 43 : index
    %c0_45 = arith.constant 0 : index
    %89 = vector.load %arg11[%c43, %c0_45] : memref<128x128xf32, #tpu.memory_space<vmem>>, vector<16x128xf32>
    %cst_46 = arith.constant 0.000000e+00 : f32
    %90 = vector.shape_cast %25 : vector<16x1xi1> to vector<16x1xi1>
    %91 = vector.broadcast %90 : vector<16x1xi1> to vector<16x128xi1>
    %92 = vector.broadcast %cst_46 : f32 to vector<16x128xf32>
    %93 = arith.select %91, %89, %92 : vector<16x128xi1>, vector<16x128xf32>
    %c12 = arith.constant 12 : index
    %c0_47 = arith.constant 0 : index
    %94 = vector.load %arg11[%c12, %c0_47] : memref<128x128xf32, #tpu.memory_space<vmem>>, vector<16x128xf32>
    %c44 = arith.constant 44 : index
    %c0_48 = arith.constant 0 : index
    %95 = vector.load %arg11[%c44, %c0_48] : memref<128x128xf32, #tpu.memory_space<vmem>>, vector<16x128xf32>
    %c13 = arith.constant 13 : index
    %c0_49 = arith.constant 0 : index
    %96 = vector.load %arg11[%c13, %c0_49] : memref<128x128xf32, #tpu.memory_space<vmem>>, vector<16x128xf32>
    %cst_50 = arith.constant 0.000000e+00 : f32
    %97 = vector.shape_cast %34 : vector<16x1xi1> to vector<16x1xi1>
    %98 = vector.broadcast %97 : vector<16x1xi1> to vector<16x128xi1>
    %99 = vector.broadcast %cst_50 : f32 to vector<16x128xf32>
    %100 = arith.select %98, %96, %99 : vector<16x128xi1>, vector<16x128xf32>
    %101 = tpu.concatenate %57, %58, %59, %64, %69, %70, %71, %76, %81, %82, %83, %88, %93, %94, %95, %100 in 1 : vector<16x128xf32>, vector<16x128xf32>, vector<16x128xf32>, vector<16x128xf32>, vector<16x128xf32>, vector<16x128xf32>, vector<16x128xf32>, vector<16x128xf32>, vector<16x128xf32>, vector<16x128xf32>, vector<16x128xf32>, vector<16x128xf32>, vector<16x128xf32>, vector<16x128xf32>, vector<16x128xf32>, vector<16x128xf32> -> vector<16x2048xf32>
    %c0_51 = arith.constant 0 : index
    %c0_52 = arith.constant 0 : index
    %102 = vector.load %arg4[%c0_51, %c0_52] : memref<2048x128xbf16, #tpu.memory_space<vmem>>, vector<2048x128xbf16>
    %103 = arith.truncf %101 : vector<16x2048xf32> to vector<16x2048xbf16>
    %cst_53 = arith.constant dense<0.000000e+00> : vector<16x128xf32>
    %104 = tpu.matmul %103, %102, %cst_53 {dimension_numbers = #tpu.dot_dimension_numbers<[1], [0], [0], [1], [0, 0, 1, 1], [], []>} : vector<16x2048xbf16>, vector<2048x128xbf16>, vector<16x128xf32> -> vector<16x128xf32>
    %c0_54 = arith.constant 0 : index
    %c0_55 = arith.constant 0 : index
    %105 = vector.load %arg5[%c0_54, %c0_55] : memref<1x128xf32, #tpu.memory_space<vmem>>, vector<1x128xf32>
    %106 = vector.broadcast %105 : vector<1x128xf32> to vector<16x128xf32>
    %107 = arith.addf %104, %106 : vector<16x128xf32>
    %cst_56 = arith.constant 0.000000e+00 : f32
    %108 = vector.broadcast %cst_56 : f32 to vector<16x128xf32>
    %109 = arith.maximumf %107, %108 : vector<16x128xf32>
    %c8_57 = arith.constant 8 : index
    %c0_58 = arith.constant 0 : index
    %110 = vector.load %arg11[%c8_57, %c0_58] : memref<128x128xf32, #tpu.memory_space<vmem>>, vector<16x128xf32>
    tpu.vector_store %arg11[%c8_57, %c0_58], %109 {strides = array<i32>} : memref<128x128xf32, #tpu.memory_space<vmem>>, vector<16x128xf32>,
    %c3 = arith.constant 3 : index
    %c0_59 = arith.constant 0 : index
    %111 = vector.load %arg11[%c3, %c0_59] : memref<128x128xf32, #tpu.memory_space<vmem>>, vector<16x128xf32>
    %cst_60 = arith.constant 0.000000e+00 : f32
    %112 = vector.shape_cast %25 : vector<16x1xi1> to vector<16x1xi1>
    %113 = vector.broadcast %112 : vector<16x1xi1> to vector<16x128xi1>
    %114 = vector.broadcast %cst_60 : f32 to vector<16x128xf32>
    %115 = arith.select %113, %111, %114 : vector<16x128xi1>, vector<16x128xf32>
    %c4 = arith.constant 4 : index
    %c0_61 = arith.constant 0 : index
    %116 = vector.load %arg11[%c4, %c0_61] : memref<128x128xf32, #tpu.memory_space<vmem>>, vector<16x128xf32>
    %c5 = arith.constant 5 : index
    %c0_62 = arith.constant 0 : index
    %117 = vector.load %arg11[%c5, %c0_62] : memref<128x128xf32, #tpu.memory_space<vmem>>, vector<16x128xf32>
    %cst_63 = arith.constant 0.000000e+00 : f32
    %118 = vector.shape_cast %34 : vector<16x1xi1> to vector<16x1xi1>
    %119 = vector.broadcast %118 : vector<16x1xi1> to vector<16x128xi1>
    %120 = vector.broadcast %cst_63 : f32 to vector<16x128xf32>
    %121 = arith.select %119, %117, %120 : vector<16x128xi1>, vector<16x128xf32>
    %c7 = arith.constant 7 : index
    %c0_64 = arith.constant 0 : index
    %122 = vector.load %arg11[%c7, %c0_64] : memref<128x128xf32, #tpu.memory_space<vmem>>, vector<16x128xf32>
    %cst_65 = arith.constant 0.000000e+00 : f32
    %123 = vector.shape_cast %25 : vector<16x1xi1> to vector<16x1xi1>
    %124 = vector.broadcast %123 : vector<16x1xi1> to vector<16x128xi1>
    %125 = vector.broadcast %cst_65 : f32 to vector<16x128xf32>
    %126 = arith.select %124, %122, %125 : vector<16x128xi1>, vector<16x128xf32>
    %c8_66 = arith.constant 8 : index
    %c0_67 = arith.constant 0 : index
    %127 = vector.load %arg11[%c8_66, %c0_67] : memref<128x128xf32, #tpu.memory_space<vmem>>, vector<16x128xf32>
    %c9_68 = arith.constant 9 : index
    %c0_69 = arith.constant 0 : index
    %128 = vector.load %arg11[%c9_68, %c0_69] : memref<128x128xf32, #tpu.memory_space<vmem>>, vector<16x128xf32>
    %cst_70 = arith.constant 0.000000e+00 : f32
    %129 = vector.shape_cast %34 : vector<16x1xi1> to vector<16x1xi1>
    %130 = vector.broadcast %129 : vector<16x1xi1> to vector<16x128xi1>
    %131 = vector.broadcast %cst_70 : f32 to vector<16x128xf32>
    %132 = arith.select %130, %128, %131 : vector<16x128xi1>, vector<16x128xf32>
    %c11 = arith.constant 11 : index
    %c0_71 = arith.constant 0 : index
    %133 = vector.load %arg11[%c11, %c0_71] : memref<128x128xf32, #tpu.memory_space<vmem>>, vector<16x128xf32>
    %cst_72 = arith.constant 0.000000e+00 : f32
    %134 = vector.shape_cast %25 : vector<16x1xi1> to vector<16x1xi1>
    %135 = vector.broadcast %134 : vector<16x1xi1> to vector<16x128xi1>
    %136 = vector.broadcast %cst_72 : f32 to vector<16x128xf32>
    %137 = arith.select %135, %133, %136 : vector<16x128xi1>, vector<16x128xf32>
    %c12_73 = arith.constant 12 : index
    %c0_74 = arith.constant 0 : index
    %138 = vector.load %arg11[%c12_73, %c0_74] : memref<128x128xf32, #tpu.memory_space<vmem>>, vector<16x128xf32>
    %c13_75 = arith.constant 13 : index
    %c0_76 = arith.constant 0 : index
    %139 = vector.load %arg11[%c13_75, %c0_76] : memref<128x128xf32, #tpu.memory_space<vmem>>, vector<16x128xf32>
    %cst_77 = arith.constant 0.000000e+00 : f32
    %140 = vector.shape_cast %34 : vector<16x1xi1> to vector<16x1xi1>
    %141 = vector.broadcast %140 : vector<16x1xi1> to vector<16x128xi1>
    %142 = vector.broadcast %cst_77 : f32 to vector<16x128xf32>
    %143 = arith.select %141, %139, %142 : vector<16x128xi1>, vector<16x128xf32>
    %144 = tpu.concatenate %115, %116, %121, %126, %127, %132, %137, %138, %143 in 1 : vector<16x128xf32>, vector<16x128xf32>, vector<16x128xf32>, vector<16x128xf32>, vector<16x128xf32>, vector<16x128xf32>, vector<16x128xf32>, vector<16x128xf32>, vector<16x128xf32> -> vector<16x1152xf32>
    %c0_78 = arith.constant 0 : index
    %c0_79 = arith.constant 0 : index
    %145 = vector.load %arg6[%c0_78, %c0_79] : memref<1152x128xbf16, #tpu.memory_space<vmem>>, vector<1152x128xbf16>
    %146 = arith.truncf %144 : vector<16x1152xf32> to vector<16x1152xbf16>
    %cst_80 = arith.constant dense<0.000000e+00> : vector<16x128xf32>
    %147 = tpu.matmul %146, %145, %cst_80 {dimension_numbers = #tpu.dot_dimension_numbers<[1], [0], [0], [1], [0, 0, 1, 1], [], []>} : vector<16x1152xbf16>, vector<1152x128xbf16>, vector<16x128xf32> -> vector<16x128xf32>
    %c0_81 = arith.constant 0 : index
    %c0_82 = arith.constant 0 : index
    %148 = vector.load %arg7[%c0_81, %c0_82] : memref<1x128xf32, #tpu.memory_space<vmem>>, vector<1x128xf32>
    %149 = vector.broadcast %148 : vector<1x128xf32> to vector<16x128xf32>
    %150 = arith.addf %147, %149 : vector<16x128xf32>
    %cst_83 = arith.constant 0.000000e+00 : f32
    %151 = vector.broadcast %cst_83 : f32 to vector<16x128xf32>
    %152 = arith.maximumf %150, %151 : vector<16x128xf32>
    %c8_84 = arith.constant 8 : index
    %c0_85 = arith.constant 0 : index
    %153 = vector.load %arg11[%c8_84, %c0_85] : memref<128x128xf32, #tpu.memory_space<vmem>>, vector<16x128xf32>
    tpu.vector_store %arg11[%c8_84, %c0_85], %152 {strides = array<i32>} : memref<128x128xf32, #tpu.memory_space<vmem>>, vector<16x128xf32>,
    %c3_86 = arith.constant 3 : index
    %c0_87 = arith.constant 0 : index
    %154 = vector.load %arg11[%c3_86, %c0_87] : memref<128x128xf32, #tpu.memory_space<vmem>>, vector<16x128xf32>
    %cst_88 = arith.constant 0.000000e+00 : f32
    %155 = vector.shape_cast %25 : vector<16x1xi1> to vector<16x1xi1>
    %156 = vector.broadcast %155 : vector<16x1xi1> to vector<16x128xi1>
    %157 = vector.broadcast %cst_88 : f32 to vector<16x128xf32>
    %158 = arith.select %156, %154, %157 : vector<16x128xi1>, vector<16x128xf32>
    %c4_89 = arith.constant 4 : index
    %c0_90 = arith.constant 0 : index
    %159 = vector.load %arg11[%c4_89, %c0_90] : memref<128x128xf32, #tpu.memory_space<vmem>>, vector<16x128xf32>
    %c5_91 = arith.constant 5 : index
    %c0_92 = arith.constant 0 : index
    %160 = vector.load %arg11[%c5_91, %c0_92] : memref<128x128xf32, #tpu.memory_space<vmem>>, vector<16x128xf32>
    %cst_93 = arith.constant 0.000000e+00 : f32
    %161 = vector.shape_cast %34 : vector<16x1xi1> to vector<16x1xi1>
    %162 = vector.broadcast %161 : vector<16x1xi1> to vector<16x128xi1>
    %163 = vector.broadcast %cst_93 : f32 to vector<16x128xf32>
    %164 = arith.select %162, %160, %163 : vector<16x128xi1>, vector<16x128xf32>
    %c7_94 = arith.constant 7 : index
    %c0_95 = arith.constant 0 : index
    %165 = vector.load %arg11[%c7_94, %c0_95] : memref<128x128xf32, #tpu.memory_space<vmem>>, vector<16x128xf32>
    %cst_96 = arith.constant 0.000000e+00 : f32
    %166 = vector.shape_cast %25 : vector<16x1xi1> to vector<16x1xi1>
    %167 = vector.broadcast %166 : vector<16x1xi1> to vector<16x128xi1>
    %168 = vector.broadcast %cst_96 : f32 to vector<16x128xf32>
    %169 = arith.select %167, %165, %168 : vector<16x128xi1>, vector<16x128xf32>
    %c8_97 = arith.constant 8 : index
    %c0_98 = arith.constant 0 : index
    %170 = vector.load %arg11[%c8_97, %c0_98] : memref<128x128xf32, #tpu.memory_space<vmem>>, vector<16x128xf32>
    %c9_99 = arith.constant 9 : index
    %c0_100 = arith.constant 0 : index
    %171 = vector.load %arg11[%c9_99, %c0_100] : memref<128x128xf32, #tpu.memory_space<vmem>>, vector<16x128xf32>
    %cst_101 = arith.constant 0.000000e+00 : f32
    %172 = vector.shape_cast %34 : vector<16x1xi1> to vector<16x1xi1>
    %173 = vector.broadcast %172 : vector<16x1xi1> to vector<16x128xi1>
    %174 = vector.broadcast %cst_101 : f32 to vector<16x128xf32>
    %175 = arith.select %173, %171, %174 : vector<16x128xi1>, vector<16x128xf32>
    %c11_102 = arith.constant 11 : index
    %c0_103 = arith.constant 0 : index
    %176 = vector.load %arg11[%c11_102, %c0_103] : memref<128x128xf32, #tpu.memory_space<vmem>>, vector<16x128xf32>
    %cst_104 = arith.constant 0.000000e+00 : f32
    %177 = vector.shape_cast %25 : vector<16x1xi1> to vector<16x1xi1>
    %178 = vector.broadcast %177 : vector<16x1xi1> to vector<16x128xi1>
    %179 = vector.broadcast %cst_104 : f32 to vector<16x128xf32>
    %180 = arith.select %178, %176, %179 : vector<16x128xi1>, vector<16x128xf32>
    %c12_105 = arith.constant 12 : index
    %c0_106 = arith.constant 0 : index
    %181 = vector.load %arg11[%c12_105, %c0_106] : memref<128x128xf32, #tpu.memory_space<vmem>>, vector<16x128xf32>
    %c13_107 = arith.constant 13 : index
    %c0_108 = arith.constant 0 : index
    %182 = vector.load %arg11[%c13_107, %c0_108] : memref<128x128xf32, #tpu.memory_space<vmem>>, vector<16x128xf32>
    %cst_109 = arith.constant 0.000000e+00 : f32
    %183 = vector.shape_cast %34 : vector<16x1xi1> to vector<16x1xi1>
    %184 = vector.broadcast %183 : vector<16x1xi1> to vector<16x128xi1>
    %185 = vector.broadcast %cst_109 : f32 to vector<16x128xf32>
    %186 = arith.select %184, %182, %185 : vector<16x128xi1>, vector<16x128xf32>
    %187 = tpu.concatenate %158, %159, %164, %169, %170, %175, %180, %181, %186 in 1 : vector<16x128xf32>, vector<16x128xf32>, vector<16x128xf32>, vector<16x128xf32>, vector<16x128xf32>, vector<16x128xf32>, vector<16x128xf32>, vector<16x128xf32>, vector<16x128xf32> -> vector<16x1152xf32>
    %c0_110 = arith.constant 0 : index
    %c0_111 = arith.constant 0 : index
    %c0_112 = arith.constant 0 : index
    %188 = vector.load %arg8[%c0_110, %c0_111, %c0_112] : memref<2x1152x128xbf16, #tpu.memory_space<vmem>>, vector<1x1152x128xbf16>
    %189 = vector.shape_cast %188 : vector<1x1152x128xbf16> to vector<1152x128xbf16>
    %190 = arith.truncf %187 : vector<16x1152xf32> to vector<16x1152xbf16>
    %cst_113 = arith.constant dense<0.000000e+00> : vector<16x128xf32>
    %191 = tpu.matmul %190, %189, %cst_113 {dimension_numbers = #tpu.dot_dimension_numbers<[1], [0], [0], [1], [0, 0, 1, 1], [], []>} : vector<16x1152xbf16>, vector<1152x128xbf16>, vector<16x128xf32> -> vector<16x128xf32>
    %cst_114 = arith.constant 0.000000e+00 : f32
    %192 = vector.broadcast %cst_114 : f32 to vector<16x128xf32>
    %193 = arith.maximumf %191, %192 : vector<16x128xf32>
    %c0_115 = arith.constant 0 : index
    %c0_116 = arith.constant 0 : index
    %c0_117 = arith.constant 0 : index
    %194 = vector.load %arg9[%c0_115, %c0_116, %c0_117] : memref<2x128x128xbf16, #tpu.memory_space<vmem>>, vector<1x128x128xbf16>
    %195 = vector.shape_cast %194 : vector<1x128x128xbf16> to vector<128x128xbf16>
    %196 = arith.truncf %193 : vector<16x128xf32> to vector<16x128xbf16>
    %cst_118 = arith.constant dense<0.000000e+00> : vector<16x128xf32>
    %197 = tpu.matmul %196, %195, %cst_118 {dimension_numbers = #tpu.dot_dimension_numbers<[1], [0], [0], [1], [0, 0, 1, 1], [], []>} : vector<16x128xbf16>, vector<128x128xbf16>, vector<16x128xf32> -> vector<16x128xf32>
    %198 = arith.addf %150, %197 : vector<16x128xf32>
    %cst_119 = arith.constant 0.000000e+00 : f32
    %199 = vector.broadcast %cst_119 : f32 to vector<16x128xf32>
    %200 = arith.maximumf %198, %199 : vector<16x128xf32>
    %c8_120 = arith.constant 8 : index
    %c0_121 = arith.constant 0 : index
    %201 = vector.load %arg11[%c8_120, %c0_121] : memref<128x128xf32, #tpu.memory_space<vmem>>, vector<16x128xf32>
    tpu.vector_store %arg11[%c8_120, %c0_121], %200 {strides = array<i32>} : memref<128x128xf32, #tpu.memory_space<vmem>>, vector<16x128xf32>,
    %c3_122 = arith.constant 3 : index
    %c0_123 = arith.constant 0 : index
    %202 = vector.load %arg11[%c3_122, %c0_123] : memref<128x128xf32, #tpu.memory_space<vmem>>, vector<16x128xf32>
    %cst_124 = arith.constant 0.000000e+00 : f32
    %203 = vector.shape_cast %25 : vector<16x1xi1> to vector<16x1xi1>
    %204 = vector.broadcast %203 : vector<16x1xi1> to vector<16x128xi1>
    %205 = vector.broadcast %cst_124 : f32 to vector<16x128xf32>
    %206 = arith.select %204, %202, %205 : vector<16x128xi1>, vector<16x128xf32>
    %c4_125 = arith.constant 4 : index
    %c0_126 = arith.constant 0 : index
    %207 = vector.load %arg11[%c4_125, %c0_126] : memref<128x128xf32, #tpu.memory_space<vmem>>, vector<16x128xf32>
    %c5_127 = arith.constant 5 : index
    %c0_128 = arith.constant 0 : index
    %208 = vector.load %arg11[%c5_127, %c0_128] : memref<128x128xf32, #tpu.memory_space<vmem>>, vector<16x128xf32>
    %cst_129 = arith.constant 0.000000e+00 : f32
    %209 = vector.shape_cast %34 : vector<16x1xi1> to vector<16x1xi1>
    %210 = vector.broadcast %209 : vector<16x1xi1> to vector<16x128xi1>
    %211 = vector.broadcast %cst_129 : f32 to vector<16x128xf32>
    %212 = arith.select %210, %208, %211 : vector<16x128xi1>, vector<16x128xf32>
    %c7_130 = arith.constant 7 : index
    %c0_131 = arith.constant 0 : index
    %213 = vector.load %arg11[%c7_130, %c0_131] : memref<128x128xf32, #tpu.memory_space<vmem>>, vector<16x128xf32>
    %cst_132 = arith.constant 0.000000e+00 : f32
    %214 = vector.shape_cast %25 : vector<16x1xi1> to vector<16x1xi1>
    %215 = vector.broadcast %214 : vector<16x1xi1> to vector<16x128xi1>
    %216 = vector.broadcast %cst_132 : f32 to vector<16x128xf32>
    %217 = arith.select %215, %213, %216 : vector<16x128xi1>, vector<16x128xf32>
    %c8_133 = arith.constant 8 : index
    %c0_134 = arith.constant 0 : index
    %218 = vector.load %arg11[%c8_133, %c0_134] : memref<128x128xf32, #tpu.memory_space<vmem>>, vector<16x128xf32>
    %c9_135 = arith.constant 9 : index
    %c0_136 = arith.constant 0 : index
    %219 = vector.load %arg11[%c9_135, %c0_136] : memref<128x128xf32, #tpu.memory_space<vmem>>, vector<16x128xf32>
    %cst_137 = arith.constant 0.000000e+00 : f32
    %220 = vector.shape_cast %34 : vector<16x1xi1> to vector<16x1xi1>
    %221 = vector.broadcast %220 : vector<16x1xi1> to vector<16x128xi1>
    %222 = vector.broadcast %cst_137 : f32 to vector<16x128xf32>
    %223 = arith.select %221, %219, %222 : vector<16x128xi1>, vector<16x128xf32>
    %c11_138 = arith.constant 11 : index
    %c0_139 = arith.constant 0 : index
    %224 = vector.load %arg11[%c11_138, %c0_139] : memref<128x128xf32, #tpu.memory_space<vmem>>, vector<16x128xf32>
    %cst_140 = arith.constant 0.000000e+00 : f32
    %225 = vector.shape_cast %25 : vector<16x1xi1> to vector<16x1xi1>
    %226 = vector.broadcast %225 : vector<16x1xi1> to vector<16x128xi1>
    %227 = vector.broadcast %cst_140 : f32 to vector<16x128xf32>
    %228 = arith.select %226, %224, %227 : vector<16x128xi1>, vector<16x128xf32>
    %c12_141 = arith.constant 12 : index
    %c0_142 = arith.constant 0 : index
    %229 = vector.load %arg11[%c12_141, %c0_142] : memref<128x128xf32, #tpu.memory_space<vmem>>, vector<16x128xf32>
    %c13_143 = arith.constant 13 : index
    %c0_144 = arith.constant 0 : index
    %230 = vector.load %arg11[%c13_143, %c0_144] : memref<128x128xf32, #tpu.memory_space<vmem>>, vector<16x128xf32>
    %cst_145 = arith.constant 0.000000e+00 : f32
    %231 = vector.shape_cast %34 : vector<16x1xi1> to vector<16x1xi1>
    %232 = vector.broadcast %231 : vector<16x1xi1> to vector<16x128xi1>
    %233 = vector.broadcast %cst_145 : f32 to vector<16x128xf32>
    %234 = arith.select %232, %230, %233 : vector<16x128xi1>, vector<16x128xf32>
    %235 = tpu.concatenate %206, %207, %212, %217, %218, %223, %228, %229, %234 in 1 : vector<16x128xf32>, vector<16x128xf32>, vector<16x128xf32>, vector<16x128xf32>, vector<16x128xf32>, vector<16x128xf32>, vector<16x128xf32>, vector<16x128xf32>, vector<16x128xf32> -> vector<16x1152xf32>
    %c1 = arith.constant 1 : index
    %c0_146 = arith.constant 0 : index
    %c0_147 = arith.constant 0 : index
    %236 = vector.load %arg8[%c1, %c0_146, %c0_147] : memref<2x1152x128xbf16, #tpu.memory_space<vmem>>, vector<1x1152x128xbf16>
    %237 = vector.shape_cast %236 : vector<1x1152x128xbf16> to vector<1152x128xbf16>
    %238 = arith.truncf %235 : vector<16x1152xf32> to vector<16x1152xbf16>
    %cst_148 = arith.constant dense<0.000000e+00> : vector<16x128xf32>
    %239 = tpu.matmul %238, %237, %cst_148 {dimension_numbers = #tpu.dot_dimension_numbers<[1], [0], [0], [1], [0, 0, 1, 1], [], []>} : vector<16x1152xbf16>, vector<1152x128xbf16>, vector<16x128xf32> -> vector<16x128xf32>
    %cst_149 = arith.constant 0.000000e+00 : f32
    %240 = vector.broadcast %cst_149 : f32 to vector<16x128xf32>
    %241 = arith.maximumf %239, %240 : vector<16x128xf32>
    %c1_150 = arith.constant 1 : index
    %c0_151 = arith.constant 0 : index
    %c0_152 = arith.constant 0 : index
    %242 = vector.load %arg9[%c1_150, %c0_151, %c0_152] : memref<2x128x128xbf16, #tpu.memory_space<vmem>>, vector<1x128x128xbf16>
    %243 = vector.shape_cast %242 : vector<1x128x128xbf16> to vector<128x128xbf16>
    %244 = arith.truncf %241 : vector<16x128xf32> to vector<16x128xbf16>
    %cst_153 = arith.constant dense<0.000000e+00> : vector<16x128xf32>
    %245 = tpu.matmul %244, %243, %cst_153 {dimension_numbers = #tpu.dot_dimension_numbers<[1], [0], [0], [1], [0, 0, 1, 1], [], []>} : vector<16x128xbf16>, vector<128x128xbf16>, vector<16x128xf32> -> vector<16x128xf32>
    %246 = arith.addf %198, %245 : vector<16x128xf32>
    %cst_154 = arith.constant 0.000000e+00 : f32
    %247 = vector.broadcast %cst_154 : f32 to vector<16x128xf32>
    %248 = arith.maximumf %246, %247 : vector<16x128xf32>
    %c0_155 = arith.constant 0 : index
    %c0_156 = arith.constant 0 : index
    %249 = vector.load %arg10[%c0_155, %c0_156] : memref<16x128xf32, #tpu.memory_space<vmem>>, vector<16x128xf32>
    tpu.vector_store %arg10[%c0_155, %c0_156], %248 {strides = array<i32>} : memref<16x128xf32, #tpu.memory_space<vmem>>, vector<16x128xf32>,
    return
  }
  func.func @transform_0(%arg0: i32) -> (i32, i32) {
    %c0_i32 = arith.constant 0 : i32
    %c0_i32_0 = arith.constant 0 : i32
    return %arg0, %c0_i32 : i32, i32
  }
  func.func @transform_1(%arg0: i32) -> (i32, i32) {
    %c0_i32 = arith.constant 0 : i32
    %c0_i32_0 = arith.constant 0 : i32
    %c0_i32_1 = arith.constant 0 : i32
    return %c0_i32, %c0_i32_0 : i32, i32
  }
  func.func @transform_2(%arg0: i32) -> (i32, i32) {
    %c0_i32 = arith.constant 0 : i32
    %c0_i32_0 = arith.constant 0 : i32
    %c0_i32_1 = arith.constant 0 : i32
    return %c0_i32, %c0_i32_0 : i32, i32
  }
  func.func @transform_3(%arg0: i32) -> (i32, i32) {
    %c0_i32 = arith.constant 0 : i32
    %c0_i32_0 = arith.constant 0 : i32
    %c0_i32_1 = arith.constant 0 : i32
    return %c0_i32, %c0_i32_0 : i32, i32
  }
  func.func @transform_4(%arg0: i32) -> (i32, i32) {
    %c0_i32 = arith.constant 0 : i32
    %c0_i32_0 = arith.constant 0 : i32
    %c0_i32_1 = arith.constant 0 : i32
    return %c0_i32, %c0_i32_0 : i32, i32
  }
  func.func @transform_5(%arg0: i32) -> (i32, i32) {
    %c0_i32 = arith.constant 0 : i32
    %c0_i32_0 = arith.constant 0 : i32
    %c0_i32_1 = arith.constant 0 : i32
    return %c0_i32, %c0_i32_0 : i32, i32
  }
  func.func @transform_6(%arg0: i32) -> (i32, i32) {
    %c0_i32 = arith.constant 0 : i32
    %c0_i32_0 = arith.constant 0 : i32
    %c0_i32_1 = arith.constant 0 : i32
    return %c0_i32, %c0_i32_0 : i32, i32
  }
  func.func @transform_7(%arg0: i32) -> (i32, i32, i32) {
    %c0_i32 = arith.constant 0 : i32
    %c0_i32_0 = arith.constant 0 : i32
    %c0_i32_1 = arith.constant 0 : i32
    %c0_i32_2 = arith.constant 0 : i32
    return %c0_i32, %c0_i32_0, %c0_i32_1 : i32, i32, i32
  }
  func.func @transform_8(%arg0: i32) -> (i32, i32, i32) {
    %c0_i32 = arith.constant 0 : i32
    %c0_i32_0 = arith.constant 0 : i32
    %c0_i32_1 = arith.constant 0 : i32
    %c0_i32_2 = arith.constant 0 : i32
    return %c0_i32, %c0_i32_0, %c0_i32_1 : i32, i32, i32
  }
  func.func @transform_9(%arg0: i32) -> (i32, i32) {
    %c0_i32 = arith.constant 0 : i32
    %c0_i32_0 = arith.constant 0 : i32
    return %arg0, %c0_i32 : i32, i32
  }
}

</mosaic_0001>

<bundles_post_ra>
// kernel: encoder_forward_pallas.1
= control target key start
LH: loop header
LB: loop body
LE: loop exit
PB: predicated region body
PF: predicated region fallthrough
CT: control target
= control target key end

     0   :  { %s6452_s30 = smov 0   ;;  %s7800_s0 = inlined_call_operand.vmem [shape: bf16[128,128], index: 0, kind: input, shape index: {}]   ;;  %s7801_s1 = inlined_call_operand.vmem [shape: bf16[128,128], index: 1, kind: input, shape index: {}]   ;;  %s7802_s2 = inlined_call_operand.vmem [shape: f32[1,128], index: 2, kind: input, shape index: {}]   ;;  %s7803_s3 = inlined_call_operand.vmem [shape: bf16[2048,128], index: 3, kind: input, shape index: {}]   ;;  %s7804_s4 = inlined_call_operand.vmem [shape: f32[1,128], index: 4, kind: input, shape index: {}]   ;;  %s7805_s5 = inlined_call_operand.vmem [shape: bf16[1152,128], index: 5, kind: input, shape index: {}]   ;;  %s7806_s6 = inlined_call_operand.vmem [shape: f32[1,128], index: 6, kind: input, shape index: {}]   ;;  %s7807_s7 = inlined_call_operand.vmem [shape: bf16[2,1152,128], index: 7, kind: input, shape index: {}]   ;;  %s7808_s8 = inlined_call_operand.vmem [shape: bf16[2,128,128], index: 8, kind: input, shape index: {}]   ;;  %s7809_s9 = inlined_call_operand.vmem [shape: f32[32,128], index: 9, kind: output, shape index: {}]  }
   0x1 LB: > { %s4763_s10 = sadd.s32 4294967295, %s6398_s30   ;;  %p4767_p0 = scmp.ge.s32.totalorder %s6398_s30, 1  ;;  %s6398_s30 = sphi %s6452_s30, %s19_s30  }
   0x2   : > { %p288_p1 = scmp.lt.s32.totalorder %s6398_s30, 3 }
   0x4   : > { %p289_p2 = pnand %p4767_p0, %p288_p1 }
   0x5   : > { %s4768_s13 = sshll.u32 (!%p289_p2), %s4763_s10, 3  ;;  %s4770_s17 = sshll.u32 (!%p289_p2), %s4763_s10, 1 }
   0x6   : > { %292 = sbr.rel (%p289_p2) target bundleno = 1807 (0x70f), region = 56  ;;  %p325_p3 = scmp.lt.s32.totalorder (!%p289_p2), %s4768_s13, 15 }
   0x7   : > { %p331_p4 = scmp.lt.s32.totalorder (!%p289_p2), %s4770_s17, 3 }
   0xb   : > { %v6018_v0 = vld [vmem:[%s7801_s1 + $0x38] sm:$0xff]   ;;  %v6019_v1 = vld [vmem:[%s7801_s1 + $0x30] sm:$0xff]   ;;  %s7815_s13 = smov (!%p325_p3, %s4768_s13), 15  ;;  %v6400_v2 = vmov 0.0   ;;  %v6020_v3 = vld [vmem:[%s7801_s1 + $0x28] sm:$0xff]   ;;  %v337_v47 = vlaneseq  ;;  %vm6401_vm6 = vmmov 0  }
   0xc   : > { %5884 = vmatprep.subr.bf16.mxu0 %v6018_v0  ;;  %395 = vst [vmem:[#allocation2 + $0x78] sm:$0xff] %v6400_v2  ;;  %380 = vst [vmem:[#allocation2] sm:$0xff] %v6400_v2  ;;  %s4769_s18 = sshll.u32 %s7815_s13, 2  ;;  %v6021_v4 = vld [vmem:[%s7801_s1 + $0x20] sm:$0xff]   ;;  %v6022_v6 = vld [vmem:[%s7801_s1 + $0x18] sm:$0xff]   ;;  %s7817_s17 = smov (!%p331_p4, %s4770_s17), 3 }
   0xd   : > { %5885 = vmatpush3.bf16.msra.mxu0 %v6018_v0  ;;  %383 = vst [vmem:[#allocation2 + $0x18] sm:$0xff] %v6400_v2  ;;  %384 = vst [vmem:[#allocation2 + $0x20] sm:$0xff] %v6400_v2  ;;  %s6474_s21 = scalar_lea.vmem %s7800_s0, %s4769_s18  ;;  %v6030_v7 = vld [vmem:[%s7803_s3 + $0x78] sm:$0xff]   ;;  %v6023_v9 = vld [vmem:[%s7801_s1 + $0x10] sm:$0xff]   ;;  %v338_v48 = vshrl.u32 %v337_v47, 7  ;;  %s4771_s18 = sshll.u32 %s7817_s17, 3 }
   0xe   : > { %387 = vst [vmem:[#allocation2 + $0x38] sm:$0xff] %v6400_v2  ;;  %388 = vst [vmem:[#allocation2 + $0x40] sm:$0xff] %v6400_v2  ;;  %5886 = vmatprep.subr.bf16.mxu0 %v6019_v1  ;;  %v6026_v5 = vld [vmem:[%s6474_s21] sm:$0xff]   ;;  %5399 = vmatprep.subr.bf16.mxu1 %v6030_v7  ;;  %v6032_v8 = vld [vmem:[%s7803_s3 + $0x38] sm:$0xff]   ;;  %s334_s22 = scalar_lea.vmem %s7809_s9, %s4771_s18 }
   0xf   : > { %391 = vst [vmem:[#allocation2 + $0x58] sm:$0xff] %v6400_v2  ;;  %392 = vst [vmem:[#allocation2 + $0x60] sm:$0xff] %v6400_v2  ;;  %5900 = vmatprep.mubr.bf16.mxu0 %v6026_v5  ;;  %5400 = vmatpush3.bf16.msra.mxu1 %v6032_v8  ;;  %v6024_v10 = vld [vmem:[%s7801_s1 + $0x8] sm:$0xff]   ;;  %v6025_v11 = vld [vmem:[%s7801_s1] sm:$0xff]   ;;  %v339_v55 = vadd.s32 8, %v338_v48  ;;  %v344_v59 = vand.u32 3, %v338_v48 }
  0x10   : > { %v6031_v12 = vld [vmem:[%s7803_s3 + $0xf8] sm:$0xff]   ;;  %v6027_v13 = vld [vmem:[%s6474_s21 + $0x8] sm:$0xff]   ;;  %v6028_v14 = vld [vmem:[%s6474_s21 + $0x10] sm:$0xff]  }
  0x11   : > { %5887 = vmatpush3.bf16.msra.mxu0 %v6019_v1  ;;  %v6033_v15 = vld [vmem:[%s7803_s3 + $0xb8] sm:$0xff]   ;;  %v6034_v17 = vld [vmem:[%s7803_s3 + $0x70] sm:$0xff]   ;;  %v6038_v21 = vld [vmem:[%s7803_s3 + $0x68] sm:$0xff]   ;;  %v351_v63 = vand.u32 3, %v339_v55  ;;  %v372_v7 = vadd.s32 1, %v344_v59 }
  0x12   : > { %5888 = vmatprep.subr.bf16.mxu0 %v6020_v3  ;;  %v6029_v16 = vld [vmem:[%s6474_s21 + $0x18] sm:$0xff]   ;;  %v6035_v18 = vld [vmem:[%s7803_s3 + $0xf0] sm:$0xff]   ;;  %5401 = vmatprep.subr.bf16.mxu1 %v6034_v17  ;;  %v6039_v22 = vld [vmem:[%s7803_s3 + $0xe8] sm:$0xff]  }
  0x13   : > { %v6036_v19 = vld [vmem:[%s7803_s3 + $0x30] sm:$0xff]   ;;  %v6040_v23 = vld [vmem:[%s7803_s3 + $0x28] sm:$0xff]   ;;  %v6042_v25 = vld [vmem:[%s7803_s3 + $0x60] sm:$0xff]   ;;  %v373_v8 = vadd.s32 1, %v351_v63  ;;  %vm376_vm0 = vcmp.lt.s32.totalorder %v372_v7, 4 }
  0x14   : > { %v6037_v20 = vld [vmem:[%s7803_s3 + $0xb0] sm:$0xff]   ;;  %5402 = vmatpush3.bf16.msra.mxu1 %v6036_v19  ;;  %v6041_v24 = vld [vmem:[%s7803_s3 + $0xa8] sm:$0xff]   ;;  %v6043_v26 = vld [vmem:[%s7803_s3 + $0xe0] sm:$0xff]  }
  0x15   : > { %5889 = vmatpush3.bf16.msra.mxu0 %v6020_v3  ;;  %5403 = vmatprep.subr.bf16.mxu1 %v6038_v21  ;;  %v6044_v27 = vld [vmem:[%s7803_s3 + $0x20] sm:$0xff]   ;;  %v6046_v29 = vld [vmem:[%s7803_s3 + $0x58] sm:$0xff]   ;;  %v6050_v33 = vld [vmem:[%s7803_s3 + $0x50] sm:$0xff]   ;;  %vm377_vm1 = vcmp.lt.s32.totalorder %v373_v8, 4 }
  0x16   : > { %5890 = vmatprep.subr.bf16.mxu0 %v6021_v4  ;;  %v6045_v28 = vld [vmem:[%s7803_s3 + $0xa0] sm:$0xff]   ;;  %v6047_v30 = vld [vmem:[%s7803_s3 + $0xd8] sm:$0xff]   ;;  %v6051_v34 = vld [vmem:[%s7803_s3 + $0xd0] sm:$0xff]  }
  0x17   : > { %v6048_v31 = vld [vmem:[%s7803_s3 + $0x18] sm:$0xff]   ;;  %v6052_v35 = vld [vmem:[%s7803_s3 + $0x10] sm:$0xff]   ;;  %v6054_v37 = vld [vmem:[%s7803_s3 + $0x48] sm:$0xff]  }
  0x18   : > { %5404 = vmatpush3.bf16.msra.mxu1 %v6040_v23  ;;  %v6049_v32 = vld [vmem:[%s7803_s3 + $0x98] sm:$0xff]   ;;  %v6053_v36 = vld [vmem:[%s7803_s3 + $0x90] sm:$0xff]   ;;  %v6055_v38 = vld [vmem:[%s7803_s3 + $0xc8] sm:$0xff]  }
  0x19   : > { %5891 = vmatpush3.bf16.msra.mxu0 %v6021_v4  ;;  %5405 = vmatprep.subr.bf16.mxu1 %v6042_v25  ;;  %v6056_v39 = vld [vmem:[%s7803_s3 + $0x8] sm:$0xff]   ;;  %v6058_v41 = vld [vmem:[%s7803_s3 + $0x40] sm:$0xff]   ;;  %v6062_v45 = vld [vmem:[%s7803_s3 + $0x178] sm:$0xff]  }
  0x1a   : > { %5892 = vmatprep.subr.bf16.mxu0 %v6022_v6  ;;  %v6057_v40 = vld [vmem:[%s7803_s3 + $0x88] sm:$0xff]   ;;  %v6059_v42 = vld [vmem:[%s7803_s3 + $0xc0] sm:$0xff]   ;;  %v6063_v46 = vld [vmem:[%s7803_s3 + $0x1f8] sm:$0xff]  }
  0x1b   : > { %v6060_v43 = vld [vmem:[%s7803_s3] sm:$0xff]   ;;  %vm6625_vm4 = vmpackc.low %vm377_vm1, %vm376_vm0  ;;  %v6065_v25 = vld [vmem:[%s7803_s3 + $0x1b8] sm:$0xff]  }
  0x1c   : > { %5406 = vmatpush3.bf16.msra.mxu1 %v6044_v27  ;;  %v6061_v44 = vld [vmem:[%s7803_s3 + $0x80] sm:$0xff]   ;;  %v6081_v55 = vld [vmem:[%s7803_s3 + $0x198] sm:$0xff]  }
  0x1d   : > { %5893 = vmatpush3.bf16.msra.mxu0 %v6022_v6  ;;  %5407 = vmatprep.subr.bf16.mxu1 %v6046_v29  ;;  %v4772_v49 = vld [vmem:[%s7802_s2] ss:$0 sm:$0xff]  ;;  %v6094_v7 = vld [vmem:[%s7803_s3 + $0x278] sm:$0xff]  }
  0x1e   : > { %5894 = vmatprep.subr.bf16.mxu0 %v6023_v9  ;;  %v6075_v47 = vld [vmem:[%s7803_s3 + $0x1e0] sm:$0xff]   ;;  %v6095_v8 = vld [vmem:[%s7803_s3 + $0x2f8] sm:$0xff]  }
  0x1f   : > { %v6076_v48 = vld [vmem:[%s7803_s3 + $0x120] sm:$0xff]  }
  0x20   : > { %5408 = vmatpush3.bf16.msra.mxu1 %v6048_v31  ;;  %v6377_v19 = vld [vmem:[%s7807_s7 + $0x460] sm:$0xff]  }
  0x21   : > { %5895 = vmatpush3.bf16.msra.mxu0 %v6023_v9  ;;  %5409 = vmatprep.subr.bf16.mxu1 %v6050_v33 }
  0x22   : > { %5896 = vmatprep.subr.bf16.mxu0 %v6024_v10 }
  0x24   : > { %5410 = vmatpush3.bf16.msra.mxu1 %v6052_v35  ;;  %v6067_v35 = vld [vmem:[%s7803_s3 + $0x1f0] sm:$0xff]  }
  0x25   : > { %5897 = vmatpush3.bf16.msra.mxu0 %v6024_v10  ;;  %5411 = vmatprep.subr.bf16.mxu1 %v6054_v37 }
  0x26   : > { %5898 = vmatprep.subr.bf16.mxu0 %v6025_v11 }
  0x28   : > { %5412 = vmatpush3.bf16.msra.mxu1 %v6056_v39  ;;  %v6069_v39 = vld [vmem:[%s7803_s3 + $0x1b0] sm:$0xff]  }
  0x29   : > { %5899 = vmatpush3.bf16.msra.mxu0 %v6025_v11  ;;  %5413 = vmatprep.subr.bf16.mxu1 %v6058_v41  ;;  %v364_v11 = vadd.s32 4294967295, %v344_v59  ;;  %v6084_v59 = vld [vmem:[%s7803_s3 + $0x110] sm:$0xff]  }
  0x2a   : > { %5421 = vmatprep.subr.bf16.mxu0 %v6031_v12 }
  0x2b   : > { %vm366_vm2 = vcmp.ge.s32.totalorder %v364_v11, 0 }
  0x2c   : > { %5901 = vmatmul.mubr.bf16.vlgmr.msra.gmra.mxu0 %v6027_v13  ;;  %5414 = vmatpush3.bf16.msra.mxu1 %v6060_v43  ;;  %v6071_v43 = vld [vmem:[%s7803_s3 + $0x1e8] sm:$0xff]  }
  0x2d   : > { %5904 = vmatprep.mubr.bf16.mxu0 %v6028_v14  ;;  %5422 = vmatpush3.bf16.msra.mxu0 %v6033_v15  ;;  %v365_v15 = vadd.s32 4294967295, %v351_v63  ;;  %v6087_v63 = vld [vmem:[%s7803_s3 + $0x1c8] sm:$0xff]  }
  0x2e   : > { %5423 = vmatprep.subr.bf16.mxu0 %v6035_v18  ;;  %5443 = vmatprep.subr.bf16.mxu1 %v6062_v45  ;;  %v6073_v45 = vld [vmem:[%s7803_s3 + $0x1a8] sm:$0xff]   ;;  %v6385_v18 = vld [vmem:[%s7808_s8 + $0x60] sm:$0xff]  }
  0x2f   : > { %vm367_vm3 = vcmp.ge.s32.totalorder %v365_v15, 0 }
  0x30   : > { %vm6629_vm5 = vmpackc.low %vm367_vm3, %vm366_vm2 }
  0x31   : > { %5424 = vmatpush3.bf16.msra.mxu0 %v6037_v20 }
  0x32   : > { %5425 = vmatprep.subr.bf16.mxu0 %v6039_v22 }
  0x34   : > { %5905 = vmatmul.mubr.bf16.gmra.mxu0 %v6029_v16 }
  0x35   : > { %5426 = vmatpush3.bf16.msra.mxu0 %v6041_v24  ;;  %v6064_v24 = vld [vmem:[%s7803_s3 + $0x138] sm:$0xff]  }
  0x36   : > { %5427 = vmatprep.subr.bf16.mxu0 %v6043_v26 }
  0x39   : > { %5428 = vmatpush3.bf16.msra.mxu0 %v6045_v28 }
  0x3a   : > { %5429 = vmatprep.subr.bf16.mxu0 %v6047_v30 }
  0x3d   : > { %5430 = vmatpush3.bf16.msra.mxu0 %v6049_v32 }
  0x3e   : > { %5431 = vmatprep.subr.bf16.mxu0 %v6051_v34  ;;  %v6066_v34 = vld [vmem:[%s7803_s3 + $0x170] sm:$0xff]  }
  0x41   : > { %5432 = vmatpush3.bf16.msra.mxu0 %v6053_v36 }
  0x42   : > { %5433 = vmatprep.subr.bf16.mxu0 %v6055_v38  ;;  %v6068_v38 = vld [vmem:[%s7803_s3 + $0x130] sm:$0xff]  }
  0x45   : > { %5434 = vmatpush3.bf16.msra.mxu0 %v6057_v40 }
  0x46   : > { %5435 = vmatprep.subr.bf16.mxu0 %v6059_v42  ;;  %v6070_v42 = vld [vmem:[%s7803_s3 + $0x168] sm:$0xff]  }
  0x49   : > { %5436 = vmatpush3.bf16.msra.mxu0 %v6061_v44  ;;  %v6072_v44 = vld [vmem:[%s7803_s3 + $0x128] sm:$0xff]  }
  0x4a   : > { %5465 = vmatprep.subr.bf16.mxu0 %v6063_v46  ;;  %v6074_v46 = vld [vmem:[%s7803_s3 + $0x160] sm:$0xff]  }
  0xec   : > { %v5902_v50 = vpop.f32.mrf.mxu0 }
  0xed   : > { %v6600_v51 = vadd.f32 %v5902_v50, %v4772_v49  ;;  %v6078_v50 = vld [vmem:[%s7803_s3 + $0x158] sm:$0xff]  }
  0xee   : > { %v533_v52 = vpop.f32.mrf.mxu0 }
  0xef   : > { %v566_v53 = vmax.f32 %v6600_v51, 0.0  ;;  %v6603_v54 = vadd.f32 %v4772_v49, %v533_v52  ;;  %v6079_v52 = vld [vmem:[%s7803_s3 + $0x1d8] sm:$0xff]   ;;  %v6101_v51 = vld [vmem:[%s7803_s3 + $0x2b0] sm:$0xff]  }
  0xf0   : > { %v5903_v56 = vpop.f32.mrf.mxu0 }
  0xf1   : > { %574 = vst [vmem:[#allocation2 + $0x28] sm:$0xff] %v566_v53  ;;  %v564_v57 = vmax.f32 %v6603_v54, 0.0  ;;  %v6608_v58 = vadd.f32 %v5903_v56, %v4772_v49  ;;  %v6080_v54 = vld [vmem:[%s7803_s3 + $0x118] sm:$0xff]   ;;  %v6082_v56 = vld [vmem:[%s7803_s3 + $0x150] sm:$0xff]  }
  0xf2   : > { %v536_v60 = vpop.f32.mrf.mxu0 }
  0xf3   : > { %572 = vst [vmem:[#allocation2 + $0x8] sm:$0xff] %v564_v57  ;;  %v567_v61 = vmax.f32 %v6608_v58, 0.0  ;;  %v537_v62 = vadd.f32 %v4772_v49, %v536_v60  ;;  %v6085_v60 = vld [vmem:[%s7803_s3 + $0x190] sm:$0xff]   ;;  %v6103_v58 = vld [vmem:[%s7803_s3 + $0x2e8] sm:$0xff]  }
  0xf4   : > { %v5906_v0 = vpop.f32.mrf.mxu0 }
  0xf5   : > { %575 = vst [vmem:[#allocation2 + $0x30] sm:$0xff] %v567_v61  ;;  %v565_v1 = vmax.f32 %v537_v62, 0.0  ;;  %v558_v2 = vadd.f32 %v5906_v0, %v4772_v49  ;;  %v6086_v62 = vld [vmem:[%s7803_s3 + $0x148] sm:$0xff]  }
  0xf6   : > { %v549_v3 = vpop.f32.mrf.mxu0  ;;  %v6088_v0 = vld [vmem:[%s7803_s3 + $0x108] sm:$0xff]  }
  0xf7   : > { %573 = vst [vmem:[#allocation2 + $0x10] sm:$0xff] %v565_v1  ;;  %v570_v4 = vmax.f32 %v558_v2, 0.0  ;;  %v6613_v5 = vadd.f32 %v4772_v49, %v549_v3  ;;  %v897_v40 = vpack.c.bf16 %v565_v1, %v564_v57  ;;  %v6083_v57 = vld [vmem:[%s7803_s3 + $0x1d0] sm:$0xff]   ;;  %v6089_v1 = vld [vmem:[%s7803_s3 + $0x188] sm:$0xff]   ;;  %v6090_v2 = vld [vmem:[%s7803_s3 + $0x140] sm:$0xff]  }
  0xf8   : > { %v5907_v6 = vpop.f32.mrf.mxu0  ;;  %v6091_v3 = vld [vmem:[%s7803_s3 + $0x1c0] sm:$0xff]  }
  0xf9   : > { %578 = vst [vmem:[#allocation2 + $0x68] sm:$0xff] %v570_v4  ;;  %v568_v9 = vmax.f32 %v6613_v5, 0.0  ;;  %v561_v10 = vadd.f32 %v5907_v6, %v4772_v49  ;;  %v6093_v6 = vld [vmem:[%s7803_s3 + $0x180] sm:$0xff]   ;;  %v6105_v5 = vld [vmem:[%s7803_s3 + $0x2a8] sm:$0xff]  }
  0xfa   : > { %v552_v12 = vpop.f32.mrf.mxu0  ;;  %v600_v11 = vld [vmem:[#allocation2 + $0x27] sm:$0xff] }
  0xfb   : > { %576 = vst [vmem:[#allocation2 + $0x48] sm:$0xff] %v568_v9  ;;  %v571_v13 = vmax.f32 %v561_v10, 0.0  ;;  %v6618_v14 = vadd.f32 %v4772_v49, %v552_v12  ;;  %v6077_v49 = vld [vmem:[%s7803_s3 + $0x1a0] sm:$0xff]   ;;  %v6096_v12 = vld [vmem:[%s7803_s3 + $0x238] sm:$0xff]  }
  0xfc   : > { %v601_v10 = vld [vmem:[#allocation2 + $0x2f] sm:$0xff] }
  0xfd   : > { %579 = vst [vmem:[#allocation2 + $0x70] sm:$0xff] %v571_v13  ;;  %v569_v16 = vmax.f32 %v6618_v14, 0.0  ;;  %v6621_v17 = vpack.c.bf16 %v571_v13, %v570_v4  ;;  %v6092_v4 = vld [vmem:[%s7803_s3 + $0x100] sm:$0xff]  }
  0xfe   : > { %v608_v26 = vld [vmem:[#allocation2 + $0x9] sm:$0xff]  ;;  %v609_v27 = vld [vmem:[#allocation2 + $0x11] sm:$0xff]  ;;  %v6107_v14 = vld [vmem:[%s7803_s3 + $0x2e0] sm:$0xff]  }
  0xff   : > { %577 = vst [vmem:[#allocation2 + $0x50] sm:$0xff] %v569_v16  ;;  %v4924_v41 = vpack.c.bf16 %v609_v27, %v608_v26  ;;  %v6100_v26 = vld [vmem:[%s7803_s3 + $0x230] sm:$0xff]  }
 0x100   : > { %v580_v23 = vld [vmem:[#allocation2 + $0x63] sm:$0xff] }
 0x101   : > { %v590_v33 = vld [vmem:[#allocation2 + $0x64] sm:$0xff] }
 0x102   : > { %v588_v20 = vld [vmem:[#allocation2 + $0x44] sm:$0xff] }
 0x103   : > { %v592_v29 = vld [vmem:[#allocation2 + $0x45] sm:$0xff] }
 0x104   : > { %v581_v21 = vld [vmem:[#allocation2 + $0x6b] sm:$0xff] }
 0x105   : > { %v591_v22 = vld [vmem:[#allocation2 + $0x6c] sm:$0xff]  ;;  %v4915_v36 = vpack.c.bf16 %v581_v21, %v580_v23  ;;  %v4921_v23 = vpack.c.bf16 %v601_v10, %v600_v11  ;;  %v6141_v10 = vld [vmem:[%s7803_s3 + $0x3a0] sm:$0xff]   ;;  %v6142_v11 = vld [vmem:[%s7803_s3 + $0x358] sm:$0xff]  }
 0x106   : > { %v589_v28 = vld [vmem:[#allocation2 + $0x4c] sm:$0xff]  ;;  %v894_v37 = vpack.c.bf16 %v591_v22, %v590_v33 }
 0x107   : > { %v593_v30 = vld [vmem:[#allocation2 + $0x4d] sm:$0xff]  ;;  %v893_v31 = vpack.c.bf16 %v589_v28, %v588_v20  ;;  %v6097_v20 = vld [vmem:[%s7803_s3 + $0x2b8] sm:$0xff]   ;;  %v6109_v28 = vld [vmem:[%s7803_s3 + $0x2a0] sm:$0xff]  }
 0x108   : > { %v4918_v32 = vpack.c.bf16 %v593_v30, %v592_v29  ;;  %v620_v13 = vld [vmem:[#allocation2 + $0x49] sm:$0xff]  ;;  %v621_v15 = vld [vmem:[#allocation2 + $0x51] sm:$0xff] }
 0x109   : > { %1715 = vmatprep.mubr.bf16.mxu1 %v893_v31  ;;  %v6098_v21 = vld [vmem:[%s7803_s3 + $0x270] sm:$0xff]   ;;  %v4930_v27 = vpack.c.bf16 %v621_v15, %v620_v13  ;;  %v6110_v29 = vld [vmem:[%s7803_s3 + $0x258] sm:$0xff]  }
 0x10a   : > { %4919 = vmatprep.mubr.msk.bf16.mxu0 %vm6625_vm4, %v4918_v32  ;;  %4916 = vmatmul.mubr.msk.bf16.vlgmr.msra.gmra.mxu1 %vm6629_vm5, %v4915_v36  ;;  %v6099_v22 = vld [vmem:[%s7803_s3 + $0x2f0] sm:$0xff]   ;;  %v6111_v30 = vld [vmem:[%s7803_s3 + $0x2d8] sm:$0xff]  }
 0x10b   : > { %1757 = vmatmul.mubr.bf16.vlgmr.msra.gmra.mxu0 %v894_v37  ;;  %5444 = vmatpush3.bf16.msra.mxu1 %v6064_v24  ;;  %v898_v24 = vpack.c.bf16 %v567_v61, %v566_v53  ;;  %v6102_v53 = vld [vmem:[%s7803_s3 + $0x268] sm:$0xff]   ;;  %v6112_v31 = vld [vmem:[%s7803_s3 + $0x218] sm:$0xff]   ;;  %v6114_v33 = vld [vmem:[%s7803_s3 + $0x250] sm:$0xff]  }
 0x10c   : > { %5466 = vmatpush3.bf16.msra.mxu0 %v6065_v25  ;;  %1797 = vmatprep.mubr.bf16.mxu1 %v897_v40  ;;  %v901_v25 = vpack.c.bf16 %v569_v16, %v568_v9  ;;  %v6104_v61 = vld [vmem:[%s7803_s3 + $0x228] sm:$0xff]   ;;  %v6106_v9 = vld [vmem:[%s7803_s3 + $0x260] sm:$0xff]   ;;  %v6113_v32 = vld [vmem:[%s7803_s3 + $0x298] sm:$0xff]  }
 0x10d   : > { %4925 = vmatprep.mubr.msk.bf16.mxu0 %vm6625_vm4, %v4924_v41  ;;  %5445 = vmatprep.subr.bf16.mxu1 %v6066_v34  ;;  %v6108_v16 = vld [vmem:[%s7803_s3 + $0x220] sm:$0xff]   ;;  %v6115_v34 = vld [vmem:[%s7803_s3 + $0x2d0] sm:$0xff]   ;;  %v6118_v37 = vld [vmem:[%s7803_s3 + $0x248] sm:$0xff]  }
 0x10e   : > { %5467 = vmatprep.subr.bf16.mxu0 %v6067_v35  ;;  %v6116_v35 = vld [vmem:[%s7803_s3 + $0x210] sm:$0xff]   ;;  %v6121_v40 = vld [vmem:[%s7803_s3 + $0x288] sm:$0xff]   ;;  %v6122_v41 = vld [vmem:[%s7803_s3 + $0x240] sm:$0xff]  }
 0x10f   : > { %5446 = vmatpush3.bf16.msra.mxu1 %v6068_v38  ;;  %v6117_v36 = vld [vmem:[%s7803_s3 + $0x290] sm:$0xff]   ;;  %v6119_v38 = vld [vmem:[%s7803_s3 + $0x2c8] sm:$0xff]   ;;  %v6144_v13 = vld [vmem:[%s7803_s3 + $0x318] sm:$0xff]  }
 0x110   : > { %5468 = vmatpush3.bf16.msra.mxu0 %v6069_v39  ;;  %5447 = vmatprep.subr.bf16.mxu1 %v6070_v42  ;;  %v6120_v39 = vld [vmem:[%s7803_s3 + $0x208] sm:$0xff]   ;;  %v6123_v42 = vld [vmem:[%s7803_s3 + $0x2c0] sm:$0xff]   ;;  %v6145_v15 = vld [vmem:[%s7803_s3 + $0x398] sm:$0xff]  }
 0x111   : > { %5469 = vmatprep.subr.bf16.mxu0 %v6071_v43  ;;  %v6124_v43 = vld [vmem:[%s7803_s3 + $0x200] sm:$0xff]  }
 0x113   : > { %5448 = vmatpush3.bf16.msra.mxu1 %v6072_v44  ;;  %v6125_v44 = vld [vmem:[%s7803_s3 + $0x280] sm:$0xff]  }
 0x114   : > { %5470 = vmatpush3.bf16.msra.mxu0 %v6073_v45  ;;  %5449 = vmatprep.subr.bf16.mxu1 %v6074_v46  ;;  %v6126_v45 = vld [vmem:[%s7803_s3 + $0x378] sm:$0xff]   ;;  %v613_v46 = vld [vmem:[#allocation2 + $0x6f] sm:$0xff] }
 0x115   : > { %5471 = vmatprep.subr.bf16.mxu0 %v6075_v47  ;;  %v6127_v47 = vld [vmem:[%s7803_s3 + $0x3f8] sm:$0xff]  }
 0x117   : > { %5450 = vmatpush3.bf16.msra.mxu1 %v6076_v48  ;;  %v6128_v48 = vld [vmem:[%s7803_s3 + $0x338] sm:$0xff]  }
 0x118   : > { %5472 = vmatpush3.bf16.msra.mxu0 %v6077_v49  ;;  %5451 = vmatprep.subr.bf16.mxu1 %v6078_v50  ;;  %v612_v49 = vld [vmem:[#allocation2 + $0x67] sm:$0xff] }
 0x119   : > { %5473 = vmatprep.subr.bf16.mxu0 %v6079_v52  ;;  %v628_v50 = vld [vmem:[#allocation2 + $0xc] sm:$0xff]  ;;  %v629_v52 = vld [vmem:[#allocation2 + $0x14] sm:$0xff] }
 0x11b   : > { %5452 = vmatpush3.bf16.msra.mxu1 %v6080_v54  ;;  %v4927_v54 = vpack.c.bf16 %v613_v46, %v612_v49  ;;  %v6174_v46 = vld [vmem:[%s7805_s5 + $0x58] sm:$0xff]  }
 0x11c   : > { %5474 = vmatpush3.bf16.msra.mxu0 %v6081_v55  ;;  %5453 = vmatprep.subr.bf16.mxu1 %v6082_v56  ;;  %v6129_v55 = vld [vmem:[%s7803_s3 + $0x3b8] sm:$0xff]   ;;  %v632_v56 = vld [vmem:[#allocation2 + $0xd] sm:$0xff] }
 0x11d   : > { %5475 = vmatprep.subr.bf16.mxu0 %v6083_v57  ;;  %v633_v57 = vld [vmem:[#allocation2 + $0x15] sm:$0xff] }
 0x11e   : > { %v6177_v49 = vld [vmem:[%s7805_s5 + $0x98] sm:$0xff]  }
 0x11f   : > { %5454 = vmatpush3.bf16.msra.mxu1 %v6084_v59  ;;  %v6130_v59 = vld [vmem:[%s7803_s3 + $0x370] sm:$0xff]  }
 0x120   : > { %5476 = vmatpush3.bf16.msra.mxu0 %v6085_v60  ;;  %5455 = vmatprep.subr.bf16.mxu1 %v6086_v62  ;;  %v905_v60 = vpack.c.bf16 %v629_v52, %v628_v50  ;;  %v6131_v62 = vld [vmem:[%s7803_s3 + $0x3f0] sm:$0xff]  }
 0x121   : > { %5477 = vmatprep.subr.bf16.mxu0 %v6087_v63  ;;  %v4936_v63 = vpack.c.bf16 %v633_v57, %v632_v56  ;;  %v6178_v50 = vld [vmem:[%s7805_s5 + $0x50] sm:$0xff]   ;;  %v6182_v56 = vld [vmem:[%s7805_s5 + $0x48] sm:$0xff]  }
 0x122   : > { %v6179_v52 = vld [vmem:[%s7805_s5 + $0xd0] sm:$0xff]   ;;  %v6183_v57 = vld [vmem:[%s7805_s5 + $0xc8] sm:$0xff]  }
 0x123   : > { %5456 = vmatpush3.bf16.msra.mxu1 %v6088_v0  ;;  %v6132_v0 = vld [vmem:[%s7803_s3 + $0x330] sm:$0xff]  }
 0x124   : > { %5478 = vmatpush3.bf16.msra.mxu0 %v6089_v1  ;;  %5457 = vmatprep.subr.bf16.mxu1 %v6090_v2  ;;  %v6133_v1 = vld [vmem:[%s7803_s3 + $0x3b0] sm:$0xff]   ;;  %v6134_v2 = vld [vmem:[%s7803_s3 + $0x368] sm:$0xff]  }
 0x125   : > { %5479 = vmatprep.subr.bf16.mxu0 %v6091_v3  ;;  %v6136_v3 = vld [vmem:[%s7803_s3 + $0x328] sm:$0xff]  }
 0x127   : > { %5458 = vmatpush3.bf16.msra.mxu1 %v6092_v4  ;;  %v6137_v4 = vld [vmem:[%s7803_s3 + $0x3a8] sm:$0xff]  }
 0x128   : > { %5480 = vmatpush3.bf16.msra.mxu0 %v6093_v6  ;;  %5487 = vmatprep.subr.bf16.mxu1 %v6094_v7  ;;  %v6138_v6 = vld [vmem:[%s7803_s3 + $0x360] sm:$0xff]  }
 0x129   : > { %5509 = vmatprep.subr.bf16.mxu0 %v6095_v8  ;;  %v6139_v7 = vld [vmem:[%s7803_s3 + $0x3e0] sm:$0xff]  }
 0x12a   : > { %4922 = vmatmul.mubr.msk.bf16.vlgmr.msra.gmra.mxu1 %vm6629_vm5, %v4921_v23  ;;  %v6140_v8 = vld [vmem:[%s7803_s3 + $0x320] sm:$0xff]   ;;  %v6149_v23 = vld [vmem:[%s7803_s3 + $0x390] sm:$0xff]  }
 0x12b   : > { %1839 = vmatmul.mubr.bf16.vlgmr.msra.gmra.mxu0 %v898_v24  ;;  %5488 = vmatpush3.bf16.msra.mxu1 %v6096_v12  ;;  %v6143_v12 = vld [vmem:[%s7803_s3 + $0x3d8] sm:$0xff]   ;;  %v6150_v24 = vld [vmem:[%s7803_s3 + $0x348] sm:$0xff]  }
 0x12c   : > { %1879 = vmatprep.mubr.bf16.mxu1 %v901_v25  ;;  %5510 = vmatpush3.bf16.msra.mxu0 %v6097_v20  ;;  %v6146_v20 = vld [vmem:[%s7803_s3 + $0x350] sm:$0xff]   ;;  %v6151_v25 = vld [vmem:[%s7803_s3 + $0x3c8] sm:$0xff]  }
 0x12d   : > { %4931 = vmatprep.mubr.msk.bf16.mxu0 %vm6625_vm4, %v4930_v27  ;;  %5489 = vmatprep.subr.bf16.mxu1 %v6098_v21  ;;  %v6147_v21 = vld [vmem:[%s7803_s3 + $0x3d0] sm:$0xff]   ;;  %v6153_v27 = vld [vmem:[%s7803_s3 + $0x388] sm:$0xff]  }
 0x12e   : > { %5511 = vmatprep.subr.bf16.mxu0 %v6099_v22  ;;  %v6148_v22 = vld [vmem:[%s7803_s3 + $0x310] sm:$0xff]  }
 0x12f   : > { %5490 = vmatpush3.bf16.msra.mxu1 %v6100_v26  ;;  %v6152_v26 = vld [vmem:[%s7803_s3 + $0x308] sm:$0xff]  }
 0x130   : > { %5512 = vmatpush3.bf16.msra.mxu0 %v6101_v51  ;;  %5491 = vmatprep.subr.bf16.mxu1 %v6102_v53  ;;  %v6154_v51 = vld [vmem:[%s7803_s3 + $0x340] sm:$0xff]  }
 0x131   : > { %5513 = vmatprep.subr.bf16.mxu0 %v6103_v58  ;;  %v6155_v53 = vld [vmem:[%s7803_s3 + $0x3c0] sm:$0xff]  }
 0x132   : > { %v6156_v58 = vld [vmem:[%s7803_s3 + $0x300] sm:$0xff]  }
 0x133   : > { %5492 = vmatpush3.bf16.msra.mxu1 %v6104_v61  ;;  %v6157_v61 = vld [vmem:[%s7803_s3 + $0x380] sm:$0xff]  }
 0x134   : > { %5514 = vmatpush3.bf16.msra.mxu0 %v6105_v5  ;;  %5493 = vmatprep.subr.bf16.mxu1 %v6106_v9  ;;  %v624_v5 = vld [vmem:[#allocation2 + $0x2b] sm:$0xff]  ;;  %v625_v9 = vld [vmem:[#allocation2 + $0x33] sm:$0xff] }
 0x135   : > { %5515 = vmatprep.subr.bf16.mxu0 %v6107_v14  ;;  %v630_v14 = vld [vmem:[#allocation2 + $0x2c] sm:$0xff] }
 0x137   : > { %5494 = vmatpush3.bf16.msra.mxu1 %v6108_v16  ;;  %v631_v16 = vld [vmem:[#allocation2 + $0x34] sm:$0xff] }
 0x138   : > { %5516 = vmatpush3.bf16.msra.mxu0 %v6109_v28  ;;  %5495 = vmatprep.subr.bf16.mxu1 %v6110_v29  ;;  %v4933_v28 = vpack.c.bf16 %v625_v9, %v624_v5  ;;  %v906_v29 = vpack.c.bf16 %v631_v16, %v630_v14 }
 0x139   : > { %5517 = vmatprep.subr.bf16.mxu0 %v6111_v30  ;;  %v6158_v30 = vld [vmem:[%s7805_s5 + $0x78] sm:$0xff]  }
 0x13b   : > { %5496 = vmatpush3.bf16.msra.mxu1 %v6112_v31  ;;  %v6159_v31 = vld [vmem:[%s7805_s5 + $0xf8] sm:$0xff]  }
 0x13c   : > { %5518 = vmatpush3.bf16.msra.mxu0 %v6113_v32  ;;  %5497 = vmatprep.subr.bf16.mxu1 %v6114_v33  ;;  %v6160_v32 = vld [vmem:[%s7805_s5 + $0x38] sm:$0xff]  }
 0x13d   : > { %5519 = vmatprep.subr.bf16.mxu0 %v6115_v34  ;;  %v6161_v33 = vld [vmem:[%s7805_s5 + $0xb8] sm:$0xff]   ;;  %v6162_v34 = vld [vmem:[%s7805_s5 + $0x70] sm:$0xff]  }
 0x13f   : > { %5498 = vmatpush3.bf16.msra.mxu1 %v6116_v35  ;;  %v6163_v35 = vld [vmem:[%s7805_s5 + $0xf0] sm:$0xff]  }
 0x140   : > { %5520 = vmatpush3.bf16.msra.mxu0 %v6117_v36  ;;  %5499 = vmatprep.subr.bf16.mxu1 %v6118_v37  ;;  %v6164_v36 = vld [vmem:[%s7805_s5 + $0x30] sm:$0xff]  }
 0x141   : > { %5521 = vmatprep.subr.bf16.mxu0 %v6119_v38  ;;  %v6165_v37 = vld [vmem:[%s7805_s5 + $0xb0] sm:$0xff]   ;;  %v6166_v38 = vld [vmem:[%s7805_s5 + $0x68] sm:$0xff]  }
 0x143   : > { %5500 = vmatpush3.bf16.msra.mxu1 %v6120_v39  ;;  %v6167_v39 = vld [vmem:[%s7805_s5 + $0xe8] sm:$0xff]  }
 0x144   : > { %5522 = vmatpush3.bf16.msra.mxu0 %v6121_v40  ;;  %5501 = vmatprep.subr.bf16.mxu1 %v6122_v41  ;;  %v6168_v40 = vld [vmem:[%s7805_s5 + $0x28] sm:$0xff]  }
 0x145   : > { %5523 = vmatprep.subr.bf16.mxu0 %v6123_v42  ;;  %v6169_v41 = vld [vmem:[%s7805_s5 + $0xa8] sm:$0xff]   ;;  %v6170_v42 = vld [vmem:[%s7805_s5 + $0x60] sm:$0xff]  }
 0x147   : > { %5502 = vmatpush3.bf16.msra.mxu1 %v6124_v43  ;;  %v6171_v43 = vld [vmem:[%s7805_s5 + $0xe0] sm:$0xff]  }
 0x148   : > { %5524 = vmatpush3.bf16.msra.mxu0 %v6125_v44  ;;  %5531 = vmatprep.subr.bf16.mxu1 %v6126_v45  ;;  %v6172_v44 = vld [vmem:[%s7805_s5 + $0x20] sm:$0xff]  }
 0x149   : > { %5553 = vmatprep.subr.bf16.mxu0 %v6127_v47  ;;  %v6173_v45 = vld [vmem:[%s7805_s5 + $0xa0] sm:$0xff]   ;;  %v6175_v47 = vld [vmem:[%s7805_s5 + $0xd8] sm:$0xff]  }
 0x14a   : > { %4928 = vmatmul.mubr.msk.bf16.vlgmr.msra.gmra.mxu1 %vm6629_vm5, %v4927_v54  ;;  %v6180_v54 = vld [vmem:[%s7805_s5 + $0x10] sm:$0xff]  }
 0x14b   : > { %1921 = vmatmul.mubr.bf16.vlgmr.msra.gmra.mxu0 %v6621_v17  ;;  %5532 = vmatpush3.bf16.msra.mxu1 %v6128_v48  ;;  %v6135_v17 = vld [vmem:[%s7803_s3 + $0x3e8] sm:$0xff]   ;;  %v6176_v48 = vld [vmem:[%s7805_s5 + $0x18] sm:$0xff]  }
 0x14c   : > { %1961 = vmatprep.mubr.bf16.mxu1 %v905_v60  ;;  %5554 = vmatpush3.bf16.msra.mxu0 %v6129_v55  ;;  %v6181_v55 = vld [vmem:[%s7805_s5 + $0x90] sm:$0xff]   ;;  %v6185_v60 = vld [vmem:[%s7805_s5 + $0x88] sm:$0xff]  }
 0x14d   : > { %4937 = vmatprep.mubr.msk.bf16.mxu0 %vm6625_vm4, %v4936_v63  ;;  %5533 = vmatprep.subr.bf16.mxu1 %v6130_v59  ;;  %v6184_v59 = vld [vmem:[%s7805_s5 + $0x8] sm:$0xff]   ;;  %v6187_v63 = vld [vmem:[%s7805_s5 + $0xc0] sm:$0xff]  }
 0x14e   : > { %5555 = vmatprep.subr.bf16.mxu0 %v6131_v62  ;;  %v6186_v62 = vld [vmem:[%s7805_s5 + $0x40] sm:$0xff]  }
 0x14f   : > { %5534 = vmatpush3.bf16.msra.mxu1 %v6132_v0  ;;  %v6188_v0 = vld [vmem:[%s7805_s5] sm:$0xff]  }
 0x150   : > { %5556 = vmatpush3.bf16.msra.mxu0 %v6133_v1  ;;  %5535 = vmatprep.subr.bf16.mxu1 %v6134_v2  ;;  %v6189_v1 = vld [vmem:[%s7805_s5 + $0x80] sm:$0xff]   ;;  %v6190_v2 = vld [vmem:[%s7805_s5 + $0x178] sm:$0xff]  }
 0x151   : > { %5557 = vmatprep.subr.bf16.mxu0 %v6135_v17  ;;  %v6191_v17 = vld [vmem:[%s7805_s5 + $0x1f8] sm:$0xff]  }
 0x153   : > { %5536 = vmatpush3.bf16.msra.mxu1 %v6136_v3 }
 0x154   : > { %5558 = vmatpush3.bf16.msra.mxu0 %v6137_v4  ;;  %5537 = vmatprep.subr.bf16.mxu1 %v6138_v6 }
 0x155   : > { %5559 = vmatprep.subr.bf16.mxu0 %v6139_v7 }
 0x157   : > { %5538 = vmatpush3.bf16.msra.mxu1 %v6140_v8 }
 0x158   : > { %5560 = vmatpush3.bf16.msra.mxu0 %v6141_v10  ;;  %5539 = vmatprep.subr.bf16.mxu1 %v6142_v11 }
 0x159   : > { %5561 = vmatprep.subr.bf16.mxu0 %v6143_v12 }
 0x15b   : > { %5540 = vmatpush3.bf16.msra.mxu1 %v6144_v13 }
 0x15c   : > { %5562 = vmatpush3.bf16.msra.mxu0 %v6145_v15  ;;  %5541 = vmatprep.subr.bf16.mxu1 %v6146_v20 }
 0x15d   : > { %5563 = vmatprep.subr.bf16.mxu0 %v6147_v21 }
 0x15f   : > { %5542 = vmatpush3.bf16.msra.mxu1 %v6148_v22 }
 0x160   : > { %5564 = vmatpush3.bf16.msra.mxu0 %v6149_v23  ;;  %5543 = vmatprep.subr.bf16.mxu1 %v6150_v24 }
 0x161   : > { %5565 = vmatprep.subr.bf16.mxu0 %v6151_v25 }
 0x163   : > { %5544 = vmatpush3.bf16.msra.mxu1 %v6152_v26  ;;  %v4785_v26 = vld [vmem:[%s7804_s4] ss:$0 sm:$0xff] }
 0x164   : > { %5566 = vmatpush3.bf16.msra.mxu0 %v6153_v27  ;;  %5545 = vmatprep.subr.bf16.mxu1 %v6154_v51 }
 0x165   : > { %5567 = vmatprep.subr.bf16.mxu0 %v6155_v53 }
 0x167   : > { %5546 = vmatpush3.bf16.msra.mxu1 %v6156_v58 }
 0x168   : > { %5568 = vmatpush3.bf16.msra.mxu0 %v6157_v61  ;;  %5575 = vmatprep.subr.bf16.mxu1 %v6158_v30 }
 0x169   : > { %5597 = vmatprep.subr.bf16.mxu0 %v6159_v31 }
 0x16a   : > { %4934 = vmatmul.mubr.msk.bf16.vlgmr.msra.gmra.mxu1 %vm6629_vm5, %v4933_v28 }
 0x16b   : > { %2003 = vmatmul.mubr.bf16.vlgmr.msra.gmra.mxu0 %v906_v29  ;;  %5576 = vmatpush3.bf16.msra.mxu1 %v6160_v32 }
 0x16c   : > { %5598 = vmatpush3.bf16.msra.mxu0 %v6161_v33  ;;  %5577 = vmatprep.subr.bf16.mxu1 %v6162_v34 }
 0x16d   : > { %5599 = vmatprep.subr.bf16.mxu0 %v6163_v35 }
 0x16f   : > { %5578 = vmatpush3.bf16.msra.mxu1 %v6164_v36 }
 0x170   : > { %5600 = vmatpush3.bf16.msra.mxu0 %v6165_v37  ;;  %5579 = vmatprep.subr.bf16.mxu1 %v6166_v38 }
 0x171   : > { %5601 = vmatprep.subr.bf16.mxu0 %v6167_v39 }
 0x173   : > { %5580 = vmatpush3.bf16.msra.mxu1 %v6168_v40 }
 0x174   : > { %5602 = vmatpush3.bf16.msra.mxu0 %v6169_v41  ;;  %5581 = vmatprep.subr.bf16.mxu1 %v6170_v42 }
 0x175   : > { %5603 = vmatprep.subr.bf16.mxu0 %v6171_v43 }
 0x177   : > { %5582 = vmatpush3.bf16.msra.mxu1 %v6172_v44 }
 0x178   : > { %5604 = vmatpush3.bf16.msra.mxu0 %v6173_v45  ;;  %5583 = vmatprep.subr.bf16.mxu1 %v6174_v46 }
 0x179   : > { %5605 = vmatprep.subr.bf16.mxu0 %v6175_v47 }
 0x17b   : > { %5584 = vmatpush3.bf16.msra.mxu1 %v6176_v48 }
 0x17c   : > { %5606 = vmatpush3.bf16.msra.mxu0 %v6177_v49  ;;  %5585 = vmatprep.subr.bf16.mxu1 %v6178_v50 }
 0x17d   : > { %5607 = vmatprep.subr.bf16.mxu0 %v6179_v52 }
 0x17f   : > { %5586 = vmatpush3.bf16.msra.mxu1 %v6180_v54 }
 0x180   : > { %5608 = vmatpush3.bf16.msra.mxu0 %v6181_v55  ;;  %5587 = vmatprep.subr.bf16.mxu1 %v6182_v56 }
 0x181   : > { %5609 = vmatprep.subr.bf16.mxu0 %v6183_v57 }
 0x183   : > { %5588 = vmatpush3.bf16.msra.mxu1 %v6184_v59 }
 0x184   : > { %5610 = vmatpush3.bf16.msra.mxu0 %v6185_v60  ;;  %5589 = vmatprep.subr.bf16.mxu1 %v6186_v62 }
 0x185   : > { %5611 = vmatprep.subr.bf16.mxu0 %v6187_v63 }
 0x187   : > { %5590 = vmatpush3.bf16.msra.mxu1 %v6188_v0 }
 0x188   : > { %5612 = vmatpush3.bf16.msra.mxu0 %v6189_v1  ;;  %5619 = vmatprep.subr.bf16.mxu1 %v6190_v2 }
 0x189   : > { %5641 = vmatprep.subr.bf16.mxu0 %v6191_v17 }
 0x1ca   : > { %v5415_v3 = vpop.f32.mrf.mxu1 }
 0x1cb   : > { %v5437_v4 = vpop.f32.mrf.mxu0 }
 0x1cc   : > { %v5416_v6 = vpop.f32.mrf.mxu1 }
 0x1cd   : > { %v5438_v7 = vpop.f32.mrf.mxu0  ;;  %v5417_v25 = vadd.f32 %v5416_v6, %v5415_v3 }
 0x1ce   : > { %v5418_v8 = vpop.f32.mrf.mxu1  ;;  %v5439_v9 = vadd.f32 %v5438_v7, %v5437_v4 }
 0x1cf   : > { %v5440_v10 = vpop.f32.mrf.mxu0  ;;  %v1718_v53 = vadd.f32 %v5417_v25, %v4785_v26 }
 0x1d0   : > { %v5419_v11 = vpop.f32.mrf.mxu1 }
 0x1d1   : > { %v5441_v13 = vpop.f32.mrf.mxu0  ;;  %v5420_v58 = vadd.f32 %v5419_v11, %v5418_v8  ;;  %v1759_v16 = vadd.f32 %v5439_v9, %v1718_v53  ;;  %v6195_v9 = vld [vmem:[%s7805_s5 + $0x1f0] sm:$0xff]  }
 0x1d2   : > { %v5442_v31 = vadd.f32 %v5441_v13, %v5440_v10 }
 0x1d3   : > { %v1721_v28 = vadd.f32 %v5420_v58, %v4785_v26 }
 0x1d5   : > { %v1762_v34 = vadd.f32 %v5442_v31, %v1721_v28  ;;  %v6196_v28 = vld [vmem:[%s7805_s5 + $0x130] sm:$0xff]   ;;  %v6199_v31 = vld [vmem:[%s7805_s5 + $0x1e8] sm:$0xff]  }
 0x1ea   : > { %v5459_v12 = vpop.f32.mrf.mxu1 }
 0x1eb   : > { %v5481_v15 = vpop.f32.mrf.mxu0 }
 0x1ec   : > { %v5460_v20 = vpop.f32.mrf.mxu1 }
 0x1ed   : > { %v5482_v21 = vpop.f32.mrf.mxu0  ;;  %v5461_v14 = vadd.f32 %v5460_v20, %v5459_v12  ;;  %v6193_v20 = vld [vmem:[%s7805_s5 + $0x1b8] sm:$0xff]  }
 0x1ee   : > { %v5462_v22 = vpop.f32.mrf.mxu1  ;;  %v5483_v35 = vadd.f32 %v5482_v21, %v5481_v15  ;;  %v6192_v15 = vld [vmem:[%s7805_s5 + $0x138] sm:$0xff]  }
 0x1ef   : > { %v5484_v23 = vpop.f32.mrf.mxu0  ;;  %v1800_v32 = vadd.f32 %v5461_v14, %v1759_v16 }
 0x1f0   : > { %v5463_v24 = vpop.f32.mrf.mxu1 }
 0x1f1   : > { %v5485_v51 = vpop.f32.mrf.mxu0  ;;  %v5464_v33 = vadd.f32 %v5463_v24, %v5462_v22  ;;  %v1841_v39 = vadd.f32 %v5483_v35, %v1800_v32  ;;  %v6200_v32 = vld [vmem:[%s7805_s5 + $0x128] sm:$0xff]   ;;  %v6203_v35 = vld [vmem:[%s7805_s5 + $0x1e0] sm:$0xff]  }
 0x1f2   : > { %v5486_v41 = vadd.f32 %v5485_v51, %v5484_v23 }
 0x1f3   : > { %v1803_v40 = vadd.f32 %v5464_v33, %v1762_v34  ;;  %v6201_v33 = vld [vmem:[%s7805_s5 + $0x1a8] sm:$0xff]   ;;  %v6202_v34 = vld [vmem:[%s7805_s5 + $0x160] sm:$0xff]  }
 0x1f5   : > { %v1844_v46 = vadd.f32 %v5486_v41, %v1803_v40  ;;  %v6208_v40 = vld [vmem:[%s7805_s5 + $0x118] sm:$0xff]  }
 0x1f6   : > { %v6209_v41 = vld [vmem:[%s7805_s5 + $0x198] sm:$0xff]  }
 0x20a   : > { %v5503_v27 = vpop.f32.mrf.mxu1 }
 0x20b   : > { %v5525_v61 = vpop.f32.mrf.mxu0 }
 0x20c   : > { %v5504_v5 = vpop.f32.mrf.mxu1 }
 0x20d   : > { %v5526_v29 = vpop.f32.mrf.mxu0  ;;  %v5505_v36 = vadd.f32 %v5504_v5, %v5503_v27  ;;  %v6194_v5 = vld [vmem:[%s7805_s5 + $0x170] sm:$0xff]  }
 0x20e   : > { %v5506_v30 = vpop.f32.mrf.mxu1  ;;  %v5527_v47 = vadd.f32 %v5526_v29, %v5525_v61  ;;  %v6197_v29 = vld [vmem:[%s7805_s5 + $0x1b0] sm:$0xff]  }
 0x20f   : > { %v5528_v37 = vpop.f32.mrf.mxu0  ;;  %v1882_v42 = vadd.f32 %v5505_v36, %v1841_v39  ;;  %v6204_v36 = vld [vmem:[%s7805_s5 + $0x120] sm:$0xff]   ;;  %v6207_v39 = vld [vmem:[%s7805_s5 + $0x1d8] sm:$0xff]  }
 0x210   : > { %v5507_v38 = vpop.f32.mrf.mxu1 }
 0x211   : > { %v5508_v43 = vadd.f32 %v5507_v38, %v5506_v30  ;;  %v5529_v44 = vpop.f32.mrf.mxu0  ;;  %v1923_v50 = vadd.f32 %v5527_v47, %v1882_v42  ;;  %v6198_v30 = vld [vmem:[%s7805_s5 + $0x168] sm:$0xff]   ;;  %v6206_v38 = vld [vmem:[%s7805_s5 + $0x158] sm:$0xff]   ;;  %v6210_v42 = vld [vmem:[%s7805_s5 + $0x150] sm:$0xff]  }
 0x212   : > { %v5530_v57 = vadd.f32 %v5529_v44, %v5528_v37  ;;  %v6205_v37 = vld [vmem:[%s7805_s5 + $0x1a0] sm:$0xff]   ;;  %v6212_v44 = vld [vmem:[%s7805_s5 + $0x110] sm:$0xff]   ;;  %v6215_v47 = vld [vmem:[%s7805_s5 + $0x1c8] sm:$0xff]  }
 0x213   : > { %v1885_v52 = vadd.f32 %v5508_v43, %v1844_v46  ;;  %v6211_v43 = vld [vmem:[%s7805_s5 + $0x1d0] sm:$0xff]   ;;  %v6214_v46 = vld [vmem:[%s7805_s5 + $0x148] sm:$0xff]  }
 0x215   : > { %v1926_v0 = vadd.f32 %v5530_v57, %v1885_v52  ;;  %v6219_v52 = vld [vmem:[%s7805_s5 + $0x1c0] sm:$0xff]   ;;  %v6222_v57 = vld [vmem:[%s7805_s5 + $0x238] sm:$0xff]  }
 0x22a   : > { %v5547_v45 = vpop.f32.mrf.mxu1 }
 0x22b   : > { %v5569_v48 = vpop.f32.mrf.mxu0 }
 0x22c   : > { %v5548_v49 = vpop.f32.mrf.mxu1 }
 0x22d   : > { %v5549_v54 = vadd.f32 %v5548_v49, %v5547_v45  ;;  %v5570_v55 = vpop.f32.mrf.mxu0  ;;  %v6213_v45 = vld [vmem:[%s7805_s5 + $0x190] sm:$0xff]   ;;  %v6217_v49 = vld [vmem:[%s7805_s5 + $0x188] sm:$0xff]  }
 0x22e   : > { %v5550_v56 = vpop.f32.mrf.mxu1  ;;  %v5571_v60 = vadd.f32 %v5570_v55, %v5569_v48  ;;  %v6216_v48 = vld [vmem:[%s7805_s5 + $0x108] sm:$0xff]   ;;  %v6221_v55 = vld [vmem:[%s7805_s5 + $0x180] sm:$0xff]  }
 0x22f   : > { %v1964_v59 = vadd.f32 %v5549_v54, %v1923_v50  ;;  %v5572_v62 = vpop.f32.mrf.mxu0  ;;  %v6218_v50 = vld [vmem:[%s7805_s5 + $0x140] sm:$0xff]  }
 0x230   : > { %v5551_v63 = vpop.f32.mrf.mxu1  ;;  %v6220_v54 = vld [vmem:[%s7805_s5 + $0x100] sm:$0xff]  }
 0x231   : > { %v7045_v1 = vadd.f32 %v5571_v60, %v1964_v59  ;;  %v5552_v2 = vadd.f32 %v5551_v63, %v5550_v56  ;;  %v5573_v17 = vpop.f32.mrf.mxu0  ;;  %v6223_v63 = vld [vmem:[%s7805_s5 + $0x230] sm:$0xff]  }
 0x232   : > { %v5574_v6 = vadd.f32 %v5573_v17, %v5572_v62  ;;  %v7167_v62 = vld [vmem:[#allocation2 + $0x78] sm:$0xff]  ;;  %v6227_v17 = vld [vmem:[%s7805_s5 + $0x210] sm:$0xff]  }
 0x233   : > { %v2011_v3 = vmax.f32 %v7045_v1, 0.0  ;;  %v1967_v4 = vadd.f32 %v5552_v2, %v1926_v0  ;;  %v6224_v0 = vld [vmem:[%s7805_s5 + $0x228] sm:$0xff]   ;;  %v6225_v1 = vld [vmem:[%s7805_s5 + $0x220] sm:$0xff]   ;;  %v6226_v2 = vld [vmem:[%s7805_s5 + $0x218] sm:$0xff]  }
 0x235   : > { %2013 = vst [vmem:[#allocation2 + $0x8] sm:$0xff] %v2011_v3  ;;  %v7050_v7 = vadd.f32 %v5574_v6, %v1967_v4  ;;  %v6229_v4 = vld [vmem:[%s7805_s5 + $0x200] sm:$0xff]  }
 0x237   : > { %v2012_v8 = vmax.f32 %v7050_v7, 0.0 }
 0x239   : > { %2014 = vst [vmem:[#allocation2 + $0x10] sm:$0xff] %v2012_v8  ;;  %v2190_v59 = vpack.c.bf16 %v2012_v8, %v2011_v3  ;;  %v6228_v3 = vld [vmem:[%s7805_s5 + $0x208] sm:$0xff]   ;;  %v6230_v8 = vld [vmem:[%s7807_s7 + $0x78] sm:$0xff]  }
 0x23c   : > { %v2019_v10 = vld [vmem:[#allocation2 + $0x4] sm:$0xff] }
 0x23d   : > { %v2025_v11 = vld [vmem:[#allocation2 + $0x7] sm:$0xff] }
 0x23e   : > { %v2015_v12 = vld [vmem:[#allocation2 + $0x3] sm:$0xff] }
 0x23f   : > { %v2021_v13 = vld [vmem:[#allocation2 + $0x5] sm:$0xff] }
 0x240   : > { %v2020_v21 = vld [vmem:[#allocation2 + $0xc] sm:$0xff]  ;;  %v2038_v61 = vld [vmem:[#allocation2 + $0x14] sm:$0xff] }
 0x241   : > { %v2026_v22 = vld [vmem:[#allocation2 + $0xf] sm:$0xff]  ;;  %v2187_v24 = vpack.c.bf16 %v2020_v21, %v2019_v10  ;;  %v2193_v16 = vpack.c.bf16 %v2038_v61, %v2020_v21  ;;  %v6231_v10 = vld [vmem:[%s7807_s7 + $0xf8] sm:$0xff]  }
 0x242   : > { %v7061_v23 = vld [vmem:[#allocation2 + $0xb] sm:$0xff]  ;;  %v5015_v25 = vpack.c.bf16 %v2026_v22, %v2025_v11  ;;  %v2035_v56 = vld [vmem:[#allocation2 + $0x13] sm:$0xff] }
 0x243   : > { %v5012_v26 = vpack.c.bf16 %v7061_v23, %v2015_v12  ;;  %v7064_v27 = vld [vmem:[#allocation2 + $0xd] sm:$0xff]  ;;  %2666 = vmatprep.mubr.bf16.mxu1 %v2187_v24  ;;  %v5024_v60 = vpack.c.bf16 %v2035_v56, %v7061_v23  ;;  %v2039_v6 = vld [vmem:[#allocation2 + $0x15] sm:$0xff] }
 0x244   : > { %v2031_v51 = vld [vmem:[#allocation2 + $0x9] sm:$0xff]  ;;  %v2032_v53 = vld [vmem:[#allocation2 + $0x11] sm:$0xff]  ;;  %v5018_v58 = vpack.c.bf16 %v7064_v27, %v2021_v13  ;;  %5016 = vmatprep.mubr.msk.bf16.mxu0 %vm6629_vm5, %v5015_v25  ;;  %v5027_v7 = vpack.c.bf16 %v2039_v6, %v7064_v27  ;;  %v6243_v27 = vld [vmem:[%s7807_s7 + $0xe0] sm:$0xff]  }
 0x245   : > { %5013 = vmatmul.mubr.msk.bf16.vlgmr.msra.gmra.mxu1 %vm6629_vm5, %v5012_v26  ;;  %v5021_v14 = vpack.c.bf16 %v2032_v53, %v2031_v51  ;;  %v6232_v11 = vld [vmem:[%s7807_s7 + $0x38] sm:$0xff]   ;;  %v6234_v13 = vld [vmem:[%s7807_s7 + $0x70] sm:$0xff]   ;;  %v6238_v22 = vld [vmem:[%s7807_s7 + $0x68] sm:$0xff]  }
 0x246   : > { %5019 = vmatmul.mubr.msk.bf16.vlgmr.msra.gmra.mxu0 %vm6625_vm4, %v5018_v58  ;;  %5620 = vmatpush3.bf16.msra.mxu1 %v6192_v15  ;;  %v6233_v12 = vld [vmem:[%s7807_s7 + $0xb8] sm:$0xff]   ;;  %v6235_v15 = vld [vmem:[%s7807_s7 + $0xf0] sm:$0xff]   ;;  %v6239_v23 = vld [vmem:[%s7807_s7 + $0xe8] sm:$0xff]  }
 0x247   : > { %5642 = vmatpush3.bf16.msra.mxu0 %v6193_v20  ;;  %5022 = vmatprep.mubr.msk.bf16.mxu1 %vm6625_vm4, %v5021_v14  ;;  %v6236_v20 = vld [vmem:[%s7807_s7 + $0x30] sm:$0xff]   ;;  %v6240_v24 = vld [vmem:[%s7807_s7 + $0x28] sm:$0xff]   ;;  %v6242_v26 = vld [vmem:[%s7807_s7 + $0x60] sm:$0xff]  }
 0x248   : > { %2789 = vmatprep.mubr.bf16.mxu0 %v2193_v16  ;;  %5621 = vmatprep.subr.bf16.mxu1 %v6194_v5  ;;  %v6237_v21 = vld [vmem:[%s7807_s7 + $0xb0] sm:$0xff]   ;;  %v6241_v25 = vld [vmem:[%s7807_s7 + $0xa8] sm:$0xff]   ;;  %v6244_v51 = vld [vmem:[%s7807_s7 + $0x20] sm:$0xff]  }
 0x249   : > { %5643 = vmatprep.subr.bf16.mxu0 %v6195_v9  ;;  %v6245_v53 = vld [vmem:[%s7807_s7 + $0xa0] sm:$0xff]   ;;  %v6246_v58 = vld [vmem:[%s7807_s7 + $0x58] sm:$0xff]   ;;  %v6250_v14 = vld [vmem:[%s7807_s7 + $0x50] sm:$0xff]  }
 0x24a   : > { %5622 = vmatpush3.bf16.msra.mxu1 %v6196_v28  ;;  %v6247_v61 = vld [vmem:[%s7807_s7 + $0xd8] sm:$0xff]   ;;  %v6251_v16 = vld [vmem:[%s7807_s7 + $0xd0] sm:$0xff]  }
 0x24b   : > { %5644 = vmatpush3.bf16.msra.mxu0 %v6197_v29  ;;  %5623 = vmatprep.subr.bf16.mxu1 %v6198_v30  ;;  %v6248_v5 = vld [vmem:[%s7807_s7 + $0x18] sm:$0xff]   ;;  %v6252_v28 = vld [vmem:[%s7807_s7 + $0x10] sm:$0xff]   ;;  %v6254_v30 = vld [vmem:[%s7807_s7 + $0x48] sm:$0xff]  }
 0x24c   : > { %5645 = vmatprep.subr.bf16.mxu0 %v6199_v31  ;;  %v6249_v9 = vld [vmem:[%s7807_s7 + $0x98] sm:$0xff]   ;;  %v6253_v29 = vld [vmem:[%s7807_s7 + $0x90] sm:$0xff]   ;;  %v6255_v31 = vld [vmem:[%s7807_s7 + $0xc8] sm:$0xff]  }
 0x24e   : > { %5624 = vmatpush3.bf16.msra.mxu1 %v6200_v32  ;;  %v6256_v32 = vld [vmem:[%s7807_s7 + $0x8] sm:$0xff]  }
 0x24f   : > { %5646 = vmatpush3.bf16.msra.mxu0 %v6201_v33  ;;  %5625 = vmatprep.subr.bf16.mxu1 %v6202_v34  ;;  %v6257_v33 = vld [vmem:[%s7807_s7 + $0x88] sm:$0xff]   ;;  %v6258_v34 = vld [vmem:[%s7807_s7 + $0x40] sm:$0xff]  }
 0x250   : > { %5647 = vmatprep.subr.bf16.mxu0 %v6203_v35  ;;  %v6259_v35 = vld [vmem:[%s7807_s7 + $0xc0] sm:$0xff]  }
 0x252   : > { %5626 = vmatpush3.bf16.msra.mxu1 %v6204_v36  ;;  %v6260_v36 = vld [vmem:[%s7807_s7] sm:$0xff]  }
 0x253   : > { %5648 = vmatpush3.bf16.msra.mxu0 %v6205_v37  ;;  %5627 = vmatprep.subr.bf16.mxu1 %v6206_v38  ;;  %v6261_v37 = vld [vmem:[%s7807_s7 + $0x80] sm:$0xff]   ;;  %v6262_v38 = vld [vmem:[%s7807_s7 + $0x178] sm:$0xff]  }
 0x254   : > { %5649 = vmatprep.subr.bf16.mxu0 %v6207_v39  ;;  %v6263_v39 = vld [vmem:[%s7807_s7 + $0x1f8] sm:$0xff]  }
 0x256   : > { %5628 = vmatpush3.bf16.msra.mxu1 %v6208_v40 }
 0x257   : > { %5650 = vmatpush3.bf16.msra.mxu0 %v6209_v41  ;;  %5629 = vmatprep.subr.bf16.mxu1 %v6210_v42 }
 0x258   : > { %5651 = vmatprep.subr.bf16.mxu0 %v6211_v43 }
 0x25a   : > { %5630 = vmatpush3.bf16.msra.mxu1 %v6212_v44 }
 0x25b   : > { %5652 = vmatpush3.bf16.msra.mxu0 %v6213_v45  ;;  %5631 = vmatprep.subr.bf16.mxu1 %v6214_v46 }
 0x25c   : > { %5653 = vmatprep.subr.bf16.mxu0 %v6215_v47 }
 0x25e   : > { %5632 = vmatpush3.bf16.msra.mxu1 %v6216_v48 }
 0x25f   : > { %5654 = vmatpush3.bf16.msra.mxu0 %v6217_v49  ;;  %5633 = vmatprep.subr.bf16.mxu1 %v6218_v50 }
 0x260   : > { %5655 = vmatprep.subr.bf16.mxu0 %v6219_v52  ;;  %v4938_v52 = vld [vmem:[%s7806_s6] ss:$0 sm:$0xff] }
 0x262   : > { %5634 = vmatpush3.bf16.msra.mxu1 %v6220_v54 }
 0x263   : > { %5656 = vmatpush3.bf16.msra.mxu0 %v6221_v55  ;;  %5908 = vmatprep.subr.bf16.mxu1 %v7167_v62 }
 0x264   : > { %5672 = vmatprep.subr.bf16.mxu0 %v6230_v8 }
 0x265   : > { %2749 = vmatmul.mubr.bf16.vlgmr.msra.gmra.mxu1 %v2190_v59 }
 0x266   : > { %5025 = vmatmul.mubr.msk.bf16.vlgmr.msra.gmra.mxu0 %vm6629_vm5, %v5024_v60  ;;  %5909 = vmatpush3.bf16.msra.mxu1 %v6222_v57 }
 0x267   : > { %5924 = vmatprep.mubr.msk.bf16.mxu1 %vm6401_vm6, %v7167_v62  ;;  %5910 = vmatprep.subr.bf16.mxu1 %v7167_v62 }
 0x268   : > { %5673 = vmatpush3.bf16.msra.mxu0 %v6232_v11 }
 0x269   : > { %5674 = vmatprep.subr.bf16.mxu0 %v6234_v13 }
 0x26a   : > { %5911 = vmatpush3.bf16.msra.mxu1 %v6223_v63 }
 0x26b   : > { %5912 = vmatprep.subr.bf16.mxu1 %v7167_v62 }
 0x26c   : > { %5675 = vmatpush3.bf16.msra.mxu0 %v6236_v20 }
 0x26d   : > { %5676 = vmatprep.subr.bf16.mxu0 %v6238_v22 }
 0x26e   : > { %5913 = vmatpush3.bf16.msra.mxu1 %v6224_v0 }
 0x26f   : > { %5914 = vmatprep.subr.bf16.mxu1 %v7167_v62 }
 0x270   : > { %5677 = vmatpush3.bf16.msra.mxu0 %v6240_v24 }
 0x271   : > { %5678 = vmatprep.subr.bf16.mxu0 %v6242_v26 }
 0x272   : > { %5915 = vmatpush3.bf16.msra.mxu1 %v6225_v1 }
 0x273   : > { %5916 = vmatprep.subr.bf16.mxu1 %v7167_v62 }
 0x274   : > { %5679 = vmatpush3.bf16.msra.mxu0 %v6244_v51 }
 0x275   : > { %5680 = vmatprep.subr.bf16.mxu0 %v6246_v58 }
 0x276   : > { %5917 = vmatpush3.bf16.msra.mxu1 %v6226_v2 }
 0x277   : > { %5918 = vmatprep.subr.bf16.mxu1 %v7167_v62 }
 0x278   : > { %5681 = vmatpush3.bf16.msra.mxu0 %v6248_v5  ;;  %v6264_v5 = vld [vmem:[%s7807_s7 + $0x138] sm:$0xff]  }
 0x279   : > { %5682 = vmatprep.subr.bf16.mxu0 %v6250_v14 }
 0x27a   : > { %5919 = vmatpush3.bf16.msra.mxu1 %v6227_v17 }
 0x27b   : > { %5920 = vmatprep.subr.bf16.mxu1 %v7167_v62 }
 0x27c   : > { %5683 = vmatpush3.bf16.msra.mxu0 %v6252_v28 }
 0x27d   : > { %5684 = vmatprep.subr.bf16.mxu0 %v6254_v30 }
 0x27e   : > { %5921 = vmatpush3.bf16.msra.mxu1 %v6228_v3 }
 0x27f   : > { %5922 = vmatprep.subr.bf16.mxu1 %v7167_v62 }
 0x280   : > { %5685 = vmatpush3.bf16.msra.mxu0 %v6256_v32 }
 0x281   : > { %5686 = vmatprep.subr.bf16.mxu0 %v6258_v34 }
 0x282   : > { %5923 = vmatpush3.bf16.msra.mxu1 %v6229_v4 }
 0x283   : > { %5694 = vmatprep.subr.bf16.mxu1 %v6231_v10 }
 0x284   : > { %5687 = vmatpush3.bf16.msra.mxu0 %v6260_v36 }
 0x285   : > { %5925 = vmatmul.mubr.msk.bf16.vlgmr.msra.gmra.mxu1 %vm6625_vm4, %v5027_v7  ;;  %5716 = vmatprep.subr.bf16.mxu0 %v6262_v38  ;;  %v6267_v38 = vld [vmem:[%s7807_s7 + $0x1f0] sm:$0xff]  }
 0x286   : > { %5695 = vmatpush3.bf16.msra.mxu1 %v6233_v12 }
 0x287   : > { %5696 = vmatprep.subr.bf16.mxu1 %v6235_v15 }
 0x28a   : > { %5697 = vmatpush3.bf16.msra.mxu1 %v6237_v21 }
 0x28b   : > { %5698 = vmatprep.subr.bf16.mxu1 %v6239_v23 }
 0x28e   : > { %5699 = vmatpush3.bf16.msra.mxu1 %v6241_v25 }
 0x28f   : > { %5700 = vmatprep.subr.bf16.mxu1 %v6243_v27 }
 0x292   : > { %5701 = vmatpush3.bf16.msra.mxu1 %v6245_v53 }
 0x293   : > { %5702 = vmatprep.subr.bf16.mxu1 %v6247_v61 }
 0x296   : > { %5703 = vmatpush3.bf16.msra.mxu1 %v6249_v9  ;;  %v6265_v9 = vld [vmem:[%s7807_s7 + $0x1b8] sm:$0xff]  }
 0x297   : > { %5704 = vmatprep.subr.bf16.mxu1 %v6251_v16 }
 0x29a   : > { %5705 = vmatpush3.bf16.msra.mxu1 %v6253_v29 }
 0x29b   : > { %5706 = vmatprep.subr.bf16.mxu1 %v6255_v31 }
 0x29e   : > { %5707 = vmatpush3.bf16.msra.mxu1 %v6257_v33 }
 0x29f   : > { %5708 = vmatprep.subr.bf16.mxu1 %v6259_v35 }
 0x2a2   : > { %5709 = vmatpush3.bf16.msra.mxu1 %v6261_v37  ;;  %v6266_v37 = vld [vmem:[%s7807_s7 + $0x170] sm:$0xff]  }
 0x2a3   : > { %5738 = vmatprep.subr.bf16.mxu1 %v6263_v39 }
 0x305   : > { %v5591_v40 = vpop.f32.mrf.mxu1 }
 0x306   : > { %v5613_v42 = vpop.f32.mrf.mxu0 }
 0x307   : > { %v5592_v41 = vpop.f32.mrf.mxu1 }
 0x308   : > { %v5614_v44 = vpop.f32.mrf.mxu0  ;;  %v5593_v50 = vadd.f32 %v5592_v41, %v5591_v40  ;;  %v6268_v41 = vld [vmem:[%s7807_s7 + $0x130] sm:$0xff]  }
 0x309   : > { %v5594_v43 = vpop.f32.mrf.mxu1  ;;  %v5615_v60 = vadd.f32 %v5614_v44, %v5613_v42  ;;  %v6269_v42 = vld [vmem:[%s7807_s7 + $0x1b0] sm:$0xff]   ;;  %v6271_v44 = vld [vmem:[%s7807_s7 + $0x1e8] sm:$0xff]  }
 0x30a   : > { %v5616_v46 = vpop.f32.mrf.mxu0  ;;  %v2669_v56 = vadd.f32 %v5593_v50, %v4938_v52  ;;  %v6277_v50 = vld [vmem:[%s7807_s7 + $0x1a0] sm:$0xff]  }
 0x30b   : > { %v5595_v45 = vpop.f32.mrf.mxu1 }
 0x30c   : > { %v5617_v48 = vpop.f32.mrf.mxu0  ;;  %v5596_v57 = vadd.f32 %v5595_v45, %v5594_v43  ;;  %v2710_v1 = vadd.f32 %v5615_v60, %v2669_v56  ;;  %v6270_v43 = vld [vmem:[%s7807_s7 + $0x168] sm:$0xff]   ;;  %v6281_v56 = vld [vmem:[%s7807_s7 + $0x198] sm:$0xff]   ;;  %v6284_v60 = vld [vmem:[%s7807_s7 + $0x110] sm:$0xff]  }
 0x30d   : > { %v5618_v3 = vadd.f32 %v5617_v48, %v5616_v46  ;;  %v6272_v45 = vld [vmem:[%s7807_s7 + $0x128] sm:$0xff]   ;;  %v6275_v48 = vld [vmem:[%s7807_s7 + $0x1e0] sm:$0xff]  }
 0x30e   : > { %v2672_v2 = vadd.f32 %v5596_v57, %v4938_v52  ;;  %v6273_v46 = vld [vmem:[%s7807_s7 + $0x1a8] sm:$0xff]   ;;  %v6278_v52 = vld [vmem:[%s7807_s7 + $0x158] sm:$0xff]   ;;  %v6282_v57 = vld [vmem:[%s7807_s7 + $0x150] sm:$0xff]  }
 0x310   : > { %v2713_v7 = vadd.f32 %v5618_v3, %v2672_v2  ;;  %v6288_v2 = vld [vmem:[%s7807_s7 + $0x108] sm:$0xff]   ;;  %v6290_v3 = vld [vmem:[%s7807_s7 + $0x140] sm:$0xff]  }
 0x325   : > { %v5635_v47 = vpop.f32.mrf.mxu1 }
 0x326   : > { %v5657_v54 = vpop.f32.mrf.mxu0 }
 0x327   : > { %v5636_v49 = vpop.f32.mrf.mxu1 }
 0x328   : > { %v5658_v59 = vpop.f32.mrf.mxu0  ;;  %v5637_v63 = vadd.f32 %v5636_v49, %v5635_v47  ;;  %v6274_v47 = vld [vmem:[%s7807_s7 + $0x160] sm:$0xff]  }
 0x329   : > { %v5638_v55 = vpop.f32.mrf.mxu1  ;;  %v5659_v8 = vadd.f32 %v5658_v59, %v5657_v54  ;;  %v6276_v49 = vld [vmem:[%s7807_s7 + $0x120] sm:$0xff]   ;;  %v6279_v54 = vld [vmem:[%s7807_s7 + $0x1d8] sm:$0xff]   ;;  %v6283_v59 = vld [vmem:[%s7807_s7 + $0x1d0] sm:$0xff]  }
 0x32a   : > { %v5660_v17 = vpop.f32.mrf.mxu0  ;;  %v2751_v4 = vadd.f32 %v5637_v63, %v2710_v1  ;;  %v6285_v63 = vld [vmem:[%s7807_s7 + $0x190] sm:$0xff]   ;;  %v6287_v1 = vld [vmem:[%s7807_s7 + $0x1c8] sm:$0xff]  }
 0x32b   : > { %v5639_v0 = vpop.f32.mrf.mxu1 }
 0x32c   : > { %v5640_v6 = vadd.f32 %v5639_v0, %v5638_v55  ;;  %v5661_v10 = vpop.f32.mrf.mxu0  ;;  %v2792_v12 = vadd.f32 %v5659_v8, %v2751_v4  ;;  %v6280_v55 = vld [vmem:[%s7807_s7 + $0x118] sm:$0xff]   ;;  %v6286_v0 = vld [vmem:[%s7807_s7 + $0x148] sm:$0xff]   ;;  %v6291_v4 = vld [vmem:[%s7807_s7 + $0x1c0] sm:$0xff]  }
 0x32d   : > { %v5662_v15 = vadd.f32 %v5661_v10, %v5660_v17  ;;  %v6289_v17 = vld [vmem:[%s7807_s7 + $0x188] sm:$0xff]   ;;  %v6294_v10 = vld [vmem:[%s7807_s7 + $0x238] sm:$0xff]  }
 0x32e   : > { %v2754_v11 = vadd.f32 %v5640_v6, %v2713_v7  ;;  %v6292_v6 = vld [vmem:[%s7807_s7 + $0x100] sm:$0xff]  }
 0x32f   : > { %v6293_v7 = vld [vmem:[%s7807_s7 + $0x180] sm:$0xff]  }
 0x330   : > { %v2795_v23 = vadd.f32 %v5662_v15, %v2754_v11  ;;  %v6296_v15 = vld [vmem:[%s7807_s7 + $0x228] sm:$0xff]  }
 0x345   : > { %v2832_v13 = vpop.f32.mrf.mxu1 }
 0x346   : > { %v7310_v20 = vadd.f32 %v2832_v13, %v2792_v12  ;;  %v6295_v13 = vld [vmem:[%s7807_s7 + $0x230] sm:$0xff]  }
 0x347   : > { %v5926_v21 = vpop.f32.mrf.mxu1 }
 0x348   : > { %v2839_v22 = vmax.f32 %v7310_v20, 0.0  ;;  %v6297_v21 = vld [vmem:[%s7807_s7 + $0x220] sm:$0xff]  }
 0x349   : > { %v2835_v24 = vpop.f32.mrf.mxu1 }
 0x34a   : > { %2841 = vst [vmem:[#allocation2 + $0x8] sm:$0xff] %v2839_v22  ;;  %v7315_v25 = vadd.f32 %v2835_v24, %v2795_v23  ;;  %v6299_v23 = vld [vmem:[%s7807_s7 + $0x210] sm:$0xff]   ;;  %v6300_v24 = vld [vmem:[%s7807_s7 + $0x208] sm:$0xff]  }
 0x34b   : > { %v5927_v26 = vpop.f32.mrf.mxu1 }
 0x34c   : > { %v2840_v27 = vmax.f32 %v7315_v25, 0.0  ;;  %v6301_v26 = vld [vmem:[%s7807_s7 + $0x200] sm:$0xff]  }
 0x34e   : > { %2842 = vst [vmem:[#allocation2 + $0x10] sm:$0xff] %v2840_v27  ;;  %v3018_v11 = vpack.c.bf16 %v2840_v27, %v2839_v22  ;;  %v6298_v22 = vld [vmem:[%s7807_s7 + $0x218] sm:$0xff]  }
 0x351   : > { %v2847_v51 = vld [vmem:[#allocation2 + $0x4] sm:$0xff] }
 0x352   : > { %v2853_v53 = vld [vmem:[#allocation2 + $0x7] sm:$0xff] }
 0x353   : > { %v2843_v58 = vld [vmem:[#allocation2 + $0x3] sm:$0xff] }
 0x354   : > { %v2849_v61 = vld [vmem:[#allocation2 + $0x5] sm:$0xff] }
 0x355   : > { %v2848_v14 = vld [vmem:[#allocation2 + $0xc] sm:$0xff]  ;;  %v2866_v36 = vld [vmem:[#allocation2 + $0x14] sm:$0xff] }
 0x356   : > { %v2854_v16 = vld [vmem:[#allocation2 + $0xf] sm:$0xff]  ;;  %v3015_v29 = vpack.c.bf16 %v2848_v14, %v2847_v51  ;;  %v3021_v40 = vpack.c.bf16 %v2866_v36, %v2848_v14  ;;  %v6322_v36 = vld [vmem:[%s7807_s7 + $0x2a0] sm:$0xff]  }
 0x357   : > { %v7326_v28 = vld [vmem:[#allocation2 + $0xb] sm:$0xff]  ;;  %v5105_v30 = vpack.c.bf16 %v2854_v16, %v2853_v53  ;;  %v2863_v8 = vld [vmem:[#allocation2 + $0x13] sm:$0xff] }
 0x358   : > { %v5102_v31 = vpack.c.bf16 %v7326_v28, %v2843_v58  ;;  %v7329_v32 = vld [vmem:[#allocation2 + $0xd] sm:$0xff]  ;;  %3487 = vmatprep.mubr.bf16.mxu0 %v3015_v29  ;;  %v5114_v12 = vpack.c.bf16 %v2863_v8, %v7326_v28  ;;  %v2867_v27 = vld [vmem:[#allocation2 + $0x15] sm:$0xff]  ;;  %v6309_v28 = vld [vmem:[%s7808_s8] sm:$0xff]  }
 0x359   : > { %v2859_v33 = vld [vmem:[#allocation2 + $0x9] sm:$0xff]  ;;  %v2860_v34 = vld [vmem:[#allocation2 + $0x11] sm:$0xff]  ;;  %v5108_v35 = vpack.c.bf16 %v7329_v32, %v2849_v61  ;;  %5106 = vmatprep.mubr.msk.bf16.mxu1 %vm6629_vm5, %v5105_v30  ;;  %v5117_v51 = vpack.c.bf16 %v2867_v27, %v7329_v32 }
 0x35a   : > { %5103 = vmatmul.mubr.msk.bf16.vlgmr.msra.gmra.mxu0 %vm6629_vm5, %v5102_v31  ;;  %v5111_v39 = vpack.c.bf16 %v2860_v34, %v2859_v33  ;;  %v6302_v53 = vld [vmem:[%s7808_s8 + $0x38] sm:$0xff]   ;;  %v6303_v58 = vld [vmem:[%s7808_s8 + $0x30] sm:$0xff]   ;;  %v6304_v61 = vld [vmem:[%s7808_s8 + $0x28] sm:$0xff]  }
 0x35b   : > { %5109 = vmatmul.mubr.msk.bf16.vlgmr.msra.gmra.mxu1 %vm6625_vm4, %v5108_v35  ;;  %5717 = vmatpush3.bf16.msra.mxu0 %v6264_v5  ;;  %v6305_v5 = vld [vmem:[%s7808_s8 + $0x20] sm:$0xff]   ;;  %v6307_v14 = vld [vmem:[%s7808_s8 + $0x10] sm:$0xff]   ;;  %v6308_v16 = vld [vmem:[%s7808_s8 + $0x8] sm:$0xff]  }
 0x35c   : > { %5739 = vmatpush3.bf16.msra.mxu1 %v6265_v9  ;;  %5112 = vmatprep.mubr.msk.bf16.mxu0 %vm6625_vm4, %v5111_v39  ;;  %v6306_v9 = vld [vmem:[%s7808_s8 + $0x18] sm:$0xff]   ;;  %v6314_v32 = vld [vmem:[%s7807_s7 + $0x2b0] sm:$0xff]   ;;  %v6318_v34 = vld [vmem:[%s7807_s7 + $0x2a8] sm:$0xff]  }
 0x35d   : > { %3610 = vmatprep.mubr.bf16.mxu1 %v3021_v40  ;;  %5718 = vmatprep.subr.bf16.mxu0 %v6266_v37  ;;  %v6310_v29 = vld [vmem:[%s7807_s7 + $0x2b8] sm:$0xff]   ;;  %v6316_v33 = vld [vmem:[%s7807_s7 + $0x270] sm:$0xff]   ;;  %v6320_v35 = vld [vmem:[%s7807_s7 + $0x268] sm:$0xff]  }
 0x35e   : > { %5740 = vmatprep.subr.bf16.mxu1 %v6267_v38  ;;  %v6311_v30 = vld [vmem:[%s7807_s7 + $0x338] sm:$0xff]   ;;  %v6317_v27 = vld [vmem:[%s7807_s7 + $0x2f0] sm:$0xff]  }
 0x35f   : > { %5719 = vmatpush3.bf16.msra.mxu0 %v6268_v41  ;;  %v6312_v31 = vld [vmem:[%s7807_s7 + $0x278] sm:$0xff]  }
 0x360   : > { %5741 = vmatpush3.bf16.msra.mxu1 %v6269_v42  ;;  %5720 = vmatprep.subr.bf16.mxu0 %v6270_v43 }
 0x361   : > { %5742 = vmatprep.subr.bf16.mxu1 %v6271_v44 }
 0x363   : > { %5721 = vmatpush3.bf16.msra.mxu0 %v6272_v45 }
 0x364   : > { %5743 = vmatpush3.bf16.msra.mxu1 %v6273_v46  ;;  %5722 = vmatprep.subr.bf16.mxu0 %v6274_v47 }
 0x365   : > { %5744 = vmatprep.subr.bf16.mxu1 %v6275_v48 }
 0x367   : > { %5723 = vmatpush3.bf16.msra.mxu0 %v6276_v49 }
 0x368   : > { %5745 = vmatpush3.bf16.msra.mxu1 %v6277_v50  ;;  %5724 = vmatprep.subr.bf16.mxu0 %v6278_v52 }
 0x369   : > { %5746 = vmatprep.subr.bf16.mxu1 %v6279_v54 }
 0x36b   : > { %5725 = vmatpush3.bf16.msra.mxu0 %v6280_v55 }
 0x36c   : > { %5747 = vmatpush3.bf16.msra.mxu1 %v6281_v56  ;;  %5726 = vmatprep.subr.bf16.mxu0 %v6282_v57 }
 0x36d   : > { %5748 = vmatprep.subr.bf16.mxu1 %v6283_v59 }
 0x36f   : > { %5727 = vmatpush3.bf16.msra.mxu0 %v6284_v60 }
 0x370   : > { %5749 = vmatpush3.bf16.msra.mxu1 %v6285_v63  ;;  %5728 = vmatprep.subr.bf16.mxu0 %v6286_v0 }
 0x371   : > { %5750 = vmatprep.subr.bf16.mxu1 %v6287_v1 }
 0x373   : > { %5729 = vmatpush3.bf16.msra.mxu0 %v6288_v2 }
 0x374   : > { %5751 = vmatpush3.bf16.msra.mxu1 %v6289_v17  ;;  %5730 = vmatprep.subr.bf16.mxu0 %v6290_v3 }
 0x375   : > { %5752 = vmatprep.subr.bf16.mxu1 %v6291_v4 }
 0x377   : > { %5731 = vmatpush3.bf16.msra.mxu0 %v6292_v6 }
 0x378   : > { %5753 = vmatpush3.bf16.msra.mxu1 %v6293_v7  ;;  %5928 = vmatprep.subr.bf16.mxu0 %v7167_v62 }
 0x379   : > { %5948 = vmatprep.subr.bf16.mxu1 %v7167_v62 }
 0x37a   : > { %3570 = vmatmul.mubr.bf16.vlgmr.msra.gmra.mxu0 %v3018_v11 }
 0x37b   : > { %5115 = vmatmul.mubr.msk.bf16.vlgmr.msra.gmra.mxu1 %vm6629_vm5, %v5114_v12  ;;  %5929 = vmatpush3.bf16.msra.mxu0 %v6294_v10 }
 0x37c   : > { %5944 = vmatprep.mubr.msk.bf16.mxu0 %vm6401_vm6, %v7167_v62  ;;  %5930 = vmatprep.subr.bf16.mxu0 %v7167_v62 }
 0x37d   : > { %5964 = vmatprep.mubr.msk.bf16.mxu1 %vm6401_vm6, %v7167_v62  ;;  %5949 = vmatpush3.bf16.msra.mxu1 %v6302_v53  ;;  %v6321_v53 = vld [vmem:[%s7807_s7 + $0x2e8] sm:$0xff]  }
 0x37e   : > { %5950 = vmatprep.subr.bf16.mxu1 %v7167_v62 }
 0x37f   : > { %5931 = vmatpush3.bf16.msra.mxu0 %v6295_v13 }
 0x380   : > { %5932 = vmatprep.subr.bf16.mxu0 %v7167_v62 }
 0x381   : > { %5951 = vmatpush3.bf16.msra.mxu1 %v6303_v58  ;;  %v6323_v58 = vld [vmem:[%s7807_s7 + $0x320] sm:$0xff]  }
 0x382   : > { %5952 = vmatprep.subr.bf16.mxu1 %v7167_v62 }
 0x383   : > { %5933 = vmatpush3.bf16.msra.mxu0 %v6296_v15 }
 0x384   : > { %5934 = vmatprep.subr.bf16.mxu0 %v7167_v62 }
 0x385   : > { %5953 = vmatpush3.bf16.msra.mxu1 %v6304_v61  ;;  %v6324_v61 = vld [vmem:[%s7807_s7 + $0x260] sm:$0xff]  }
 0x386   : > { %5954 = vmatprep.subr.bf16.mxu1 %v7167_v62 }
 0x387   : > { %5935 = vmatpush3.bf16.msra.mxu0 %v6297_v21 }
 0x388   : > { %5936 = vmatprep.subr.bf16.mxu0 %v7167_v62 }
 0x389   : > { %5955 = vmatpush3.bf16.msra.mxu1 %v6305_v5  ;;  %v6325_v5 = vld [vmem:[%s7807_s7 + $0x2e0] sm:$0xff]  }
 0x38a   : > { %5956 = vmatprep.subr.bf16.mxu1 %v7167_v62 }
 0x38b   : > { %5937 = vmatpush3.bf16.msra.mxu0 %v6298_v22 }
 0x38c   : > { %5938 = vmatprep.subr.bf16.mxu0 %v7167_v62 }
 0x38d   : > { %5957 = vmatpush3.bf16.msra.mxu1 %v6306_v9  ;;  %v6326_v9 = vld [vmem:[%s7807_s7 + $0x298] sm:$0xff]  }
 0x38e   : > { %5958 = vmatprep.subr.bf16.mxu1 %v7167_v62 }
 0x38f   : > { %5939 = vmatpush3.bf16.msra.mxu0 %v6299_v23  ;;  %v6313_v23 = vld [vmem:[%s7807_s7 + $0x2f8] sm:$0xff]  }
 0x390   : > { %5940 = vmatprep.subr.bf16.mxu0 %v7167_v62 }
 0x391   : > { %5959 = vmatpush3.bf16.msra.mxu1 %v6307_v14  ;;  %v6327_v14 = vld [vmem:[%s7807_s7 + $0x318] sm:$0xff]  }
 0x392   : > { %5960 = vmatprep.subr.bf16.mxu1 %v7167_v62 }
 0x393   : > { %5941 = vmatpush3.bf16.msra.mxu0 %v6300_v24 }
 0x394   : > { %5942 = vmatprep.subr.bf16.mxu0 %v7167_v62 }
 0x395   : > { %5961 = vmatpush3.bf16.msra.mxu1 %v6308_v16  ;;  %v6328_v16 = vld [vmem:[%s7807_s7 + $0x258] sm:$0xff]  }
 0x396   : > { %5962 = vmatprep.subr.bf16.mxu1 %v7167_v62 }
 0x397   : > { %5943 = vmatpush3.bf16.msra.mxu0 %v6301_v26  ;;  %v6315_v26 = vld [vmem:[%s7807_s7 + $0x330] sm:$0xff]  }
 0x398   : > { %5778 = vmatprep.subr.bf16.mxu0 %v6310_v29  ;;  %v6330_v29 = vld [vmem:[%s7807_s7 + $0x290] sm:$0xff]  }
 0x399   : > { %5963 = vmatpush3.bf16.msra.mxu1 %v6309_v28  ;;  %v6329_v28 = vld [vmem:[%s7807_s7 + $0x2d8] sm:$0xff]  }
 0x39a   : > { %5945 = vmatmul.mubr.msk.bf16.vlgmr.msra.gmra.mxu0 %vm6625_vm4, %v5117_v51  ;;  %5800 = vmatprep.subr.bf16.mxu1 %v6311_v30  ;;  %v6319_v51 = vld [vmem:[%s7807_s7 + $0x328] sm:$0xff]   ;;  %v6331_v30 = vld [vmem:[%s7807_s7 + $0x310] sm:$0xff]  }
 0x39b   : > { %5779 = vmatpush3.bf16.msra.mxu0 %v6312_v31  ;;  %v6332_v31 = vld [vmem:[%s7807_s7 + $0x250] sm:$0xff]  }
 0x39c   : > { %5780 = vmatprep.subr.bf16.mxu0 %v6314_v32  ;;  %v6333_v32 = vld [vmem:[%s7807_s7 + $0x2d0] sm:$0xff]  }
 0x39f   : > { %5781 = vmatpush3.bf16.msra.mxu0 %v6316_v33  ;;  %v6334_v33 = vld [vmem:[%s7807_s7 + $0x288] sm:$0xff]  }
 0x3a0   : > { %5782 = vmatprep.subr.bf16.mxu0 %v6318_v34  ;;  %v6335_v34 = vld [vmem:[%s7807_s7 + $0x308] sm:$0xff]  }
 0x3a3   : > { %5783 = vmatpush3.bf16.msra.mxu0 %v6320_v35  ;;  %v6336_v35 = vld [vmem:[%s7807_s7 + $0x248] sm:$0xff]  }
 0x3a4   : > { %5784 = vmatprep.subr.bf16.mxu0 %v6322_v36  ;;  %v6337_v36 = vld [vmem:[%s7807_s7 + $0x2c8] sm:$0xff]  }
 0x3a7   : > { %5785 = vmatpush3.bf16.msra.mxu0 %v6324_v61  ;;  %v6360_v61 = vld [vmem:[%s7807_s7 + $0x358] sm:$0xff]  }
 0x3a8   : > { %5786 = vmatprep.subr.bf16.mxu0 %v6326_v9  ;;  %v6362_v9 = vld [vmem:[%s7807_s7 + $0x390] sm:$0xff]  }
 0x3ab   : > { %5787 = vmatpush3.bf16.msra.mxu0 %v6328_v16  ;;  %v6364_v16 = vld [vmem:[%s7807_s7 + $0x350] sm:$0xff]  }
 0x3ac   : > { %5788 = vmatprep.subr.bf16.mxu0 %v6330_v29  ;;  %v6366_v29 = vld [vmem:[%s7807_s7 + $0x388] sm:$0xff]  }
 0x3af   : > { %5789 = vmatpush3.bf16.msra.mxu0 %v6332_v31  ;;  %v6368_v31 = vld [vmem:[%s7807_s7 + $0x348] sm:$0xff]  }
 0x3b0   : > { %5790 = vmatprep.subr.bf16.mxu0 %v6334_v33  ;;  %v6370_v33 = vld [vmem:[%s7807_s7 + $0x380] sm:$0xff]  }
 0x3b3   : > { %5791 = vmatpush3.bf16.msra.mxu0 %v6336_v35  ;;  %v6372_v35 = vld [vmem:[%s7807_s7 + $0x340] sm:$0xff]  }
 0x41a   : > { %v5688_v37 = vpop.f32.mrf.mxu0 }
 0x41b   : > { %v5710_v39 = vpop.f32.mrf.mxu1 }
 0x41c   : > { %v5689_v38 = vpop.f32.mrf.mxu0 }
 0x41d   : > { %v5711_v41 = vpop.f32.mrf.mxu1  ;;  %v5690_v50 = vadd.f32 %v5689_v38, %v5688_v37  ;;  %v6338_v37 = vld [vmem:[%s7807_s7 + $0x280] sm:$0xff]  }
 0x41e   : > { %v5691_v40 = vpop.f32.mrf.mxu0  ;;  %v5712_v52 = vadd.f32 %v5711_v41, %v5710_v39  ;;  %v6339_v38 = vld [vmem:[%s7807_s7 + $0x300] sm:$0xff]   ;;  %5792 = vmatprep.subr.bf16.mxu0 %v6338_v37  ;;  %v6342_v41 = vld [vmem:[%s7807_s7 + $0x3b8] sm:$0xff]  }
 0x41f   : > { %v5713_v43 = vpop.f32.mrf.mxu1  ;;  %v6340_v39 = vld [vmem:[%s7807_s7 + $0x240] sm:$0xff]  }
 0x420   : > { %v5692_v42 = vpop.f32.mrf.mxu0  ;;  %v3531_v60 = vadd.f32 %v5712_v52, %v5690_v50  ;;  %5793 = vmatpush3.bf16.msra.mxu0 %v6340_v39 }
 0x421   : > { %v5714_v45 = vpop.f32.mrf.mxu1  ;;  %v5693_v55 = vadd.f32 %v5692_v42, %v5691_v40  ;;  %v6341_v40 = vld [vmem:[%s7807_s7 + $0x2c0] sm:$0xff]   ;;  %v6343_v42 = vld [vmem:[%s7807_s7 + $0x438] sm:$0xff]   ;;  %5822 = vmatprep.subr.bf16.mxu0 %v6342_v41  ;;  %v6375_v41 = vld [vmem:[%s7807_s7 + $0x470] sm:$0xff]  }
 0x422   : > { %v5715_v56 = vadd.f32 %v5714_v45, %v5713_v43 }
 0x424   : > { %v3534_v0 = vadd.f32 %v5715_v56, %v5693_v55  ;;  %v6344_v56 = vld [vmem:[%s7807_s7 + $0x378] sm:$0xff]  }
 0x43a   : > { %v5732_v44 = vpop.f32.mrf.mxu0 }
 0x43b   : > { %v5754_v47 = vpop.f32.mrf.mxu1 }
 0x43c   : > { %v5733_v46 = vpop.f32.mrf.mxu0 }
 0x43d   : > { %v5755_v49 = vpop.f32.mrf.mxu1  ;;  %v5734_v57 = vadd.f32 %v5733_v46, %v5732_v44 }
 0x43e   : > { %v5735_v48 = vpop.f32.mrf.mxu0  ;;  %v5756_v17 = vadd.f32 %v5755_v49, %v5754_v47 }
 0x43f   : > { %v5757_v59 = vpop.f32.mrf.mxu1  ;;  %v3572_v1 = vadd.f32 %v5734_v57, %v3531_v60  ;;  %v6345_v57 = vld [vmem:[%s7807_s7 + $0x3f8] sm:$0xff]  }
 0x440   : > { %v5736_v54 = vpop.f32.mrf.mxu0 }
 0x441   : > { %v5737_v63 = vadd.f32 %v5736_v54, %v5735_v48  ;;  %v5758_v2 = vpop.f32.mrf.mxu1  ;;  %v3613_v7 = vadd.f32 %v5756_v17, %v3572_v1 }
 0x442   : > { %v5759_v6 = vadd.f32 %v5758_v2, %v5757_v59 }
 0x443   : > { %v3575_v3 = vadd.f32 %v5737_v63, %v3534_v0 }
 0x445   : > { %v3616_v11 = vadd.f32 %v5759_v6, %v3575_v3 }
 0x45a   : > { %v3653_v4 = vpop.f32.mrf.mxu0 }
 0x45b   : > { %v3654_v10 = vadd.f32 %v3653_v4, %v3613_v7  ;;  %v6346_v7 = vld [vmem:[%s7807_s7 + $0x3b0] sm:$0xff]  }
 0x45c   : > { %v5946_v8 = vpop.f32.mrf.mxu0 }
 0x45d   : > { %v3660_v21 = vmax.f32 %v3654_v10, 0.0  ;;  %v6347_v8 = vld [vmem:[%s7807_s7 + $0x430] sm:$0xff]  }
 0x45e   : > { %v3656_v12 = vpop.f32.mrf.mxu0 }
 0x45f   : > { %v3657_v13 = vadd.f32 %v3656_v12, %v3616_v11  ;;  %v6348_v12 = vld [vmem:[%s7807_s7 + $0x370] sm:$0xff]  }
 0x460   : > { %v5947_v15 = vpop.f32.mrf.mxu0 }
 0x461   : > { %v3661_v22 = vmax.f32 %v3657_v13, 0.0  ;;  %v6349_v13 = vld [vmem:[%s7807_s7 + $0x3f0] sm:$0xff]   ;;  %v6350_v15 = vld [vmem:[%s7807_s7 + $0x3a8] sm:$0xff]  }
 0x463   : > { %v3678_v24 = vpack.c.bf16 %v3661_v22, %v3660_v21  ;;  %v6351_v21 = vld [vmem:[%s7807_s7 + $0x428] sm:$0xff]  }
 0x464   : > { %v6352_v22 = vld [vmem:[%s7807_s7 + $0x368] sm:$0xff]  }
 0x465   : > { %5965 = vmatmul.mubr.bf16.vlgmr.msra.gmra.mxu1 %v3678_v24  ;;  %v6354_v24 = vld [vmem:[%s7807_s7 + $0x3a0] sm:$0xff]  }
 0x466   : > { %5801 = vmatpush3.bf16.msra.mxu1 %v6313_v23  ;;  %v6353_v23 = vld [vmem:[%s7807_s7 + $0x3e8] sm:$0xff]  }
 0x467   : > { %5802 = vmatprep.subr.bf16.mxu1 %v6315_v26  ;;  %v6355_v26 = vld [vmem:[%s7807_s7 + $0x420] sm:$0xff]  }
 0x46a   : > { %5803 = vmatpush3.bf16.msra.mxu1 %v6317_v27  ;;  %v6356_v27 = vld [vmem:[%s7807_s7 + $0x360] sm:$0xff]  }
 0x46b   : > { %5804 = vmatprep.subr.bf16.mxu1 %v6319_v51  ;;  %v6357_v51 = vld [vmem:[%s7807_s7 + $0x3e0] sm:$0xff]  }
 0x46e   : > { %5805 = vmatpush3.bf16.msra.mxu1 %v6321_v53  ;;  %v6358_v53 = vld [vmem:[%s7807_s7 + $0x398] sm:$0xff]  }
 0x46f   : > { %5806 = vmatprep.subr.bf16.mxu1 %v6323_v58  ;;  %v6359_v58 = vld [vmem:[%s7807_s7 + $0x418] sm:$0xff]  }
 0x472   : > { %5807 = vmatpush3.bf16.msra.mxu1 %v6325_v5  ;;  %v6361_v5 = vld [vmem:[%s7807_s7 + $0x3d8] sm:$0xff]  }
 0x473   : > { %5808 = vmatprep.subr.bf16.mxu1 %v6327_v14  ;;  %v6363_v14 = vld [vmem:[%s7807_s7 + $0x410] sm:$0xff]  }
 0x476   : > { %5809 = vmatpush3.bf16.msra.mxu1 %v6329_v28  ;;  %v6365_v28 = vld [vmem:[%s7807_s7 + $0x3d0] sm:$0xff]  }
 0x477   : > { %5810 = vmatprep.subr.bf16.mxu1 %v6331_v30  ;;  %v6367_v30 = vld [vmem:[%s7807_s7 + $0x408] sm:$0xff]  }
 0x47a   : > { %5811 = vmatpush3.bf16.msra.mxu1 %v6333_v32  ;;  %v6369_v32 = vld [vmem:[%s7807_s7 + $0x3c8] sm:$0xff]  }
 0x47b   : > { %5812 = vmatprep.subr.bf16.mxu1 %v6335_v34  ;;  %v6371_v34 = vld [vmem:[%s7807_s7 + $0x400] sm:$0xff]  }
 0x47e   : > { %5813 = vmatpush3.bf16.msra.mxu1 %v6337_v36  ;;  %v6373_v36 = vld [vmem:[%s7807_s7 + $0x3c0] sm:$0xff]  }
 0x47f   : > { %5814 = vmatprep.subr.bf16.mxu1 %v6339_v38  ;;  %v6374_v38 = vld [vmem:[%s7807_s7 + $0x478] sm:$0xff]  }
 0x482   : > { %5815 = vmatpush3.bf16.msra.mxu1 %v6341_v40 }
 0x483   : > { %5844 = vmatprep.subr.bf16.mxu1 %v6343_v42  ;;  %v6376_v42 = vld [vmem:[%s7807_s7 + $0x468] sm:$0xff]  }
 0x525   : > { %v3761_v43 = vpop.f32.mrf.mxu1 }
 0x526   : > { %v7605_v44 = vadd.f32 %v3761_v43, %v7310_v20  ;;  %v6378_v43 = vld [vmem:[%s7807_s7 + $0x458] sm:$0xff]  }
 0x527   : > { %v5966_v45 = vpop.f32.mrf.mxu1 }
 0x528   : > { %v3770_v46 = vmax.f32 %v7605_v44, 0.0  ;;  %v6379_v45 = vld [vmem:[%s7807_s7 + $0x450] sm:$0xff]  }
 0x529   : > { %v3764_v47 = vpop.f32.mrf.mxu1 }
 0x52a   : > { %3772 = vst [vmem:[#allocation2 + $0x8] sm:$0xff] %v3770_v46  ;;  %v7611_v48 = vadd.f32 %v3764_v47, %v7315_v25  ;;  %v6381_v47 = vld [vmem:[%s7807_s7 + $0x440] sm:$0xff]  }
 0x52b   : > { %v5967_v49 = vpop.f32.mrf.mxu1 }
 0x52c   : > { %v3771_v50 = vmax.f32 %v7611_v48, 0.0  ;;  %v6391_v49 = vld [vmem:[#allocation2 + $0x78] sm:$0xff] }
 0x52e   : > { %3773 = vst [vmem:[#allocation2 + $0x10] sm:$0xff] %v3771_v50  ;;  %v3950_v39 = vpack.c.bf16 %v3771_v50, %v3770_v46  ;;  %v6380_v46 = vld [vmem:[%s7807_s7 + $0x448] sm:$0xff]  }
 0x531   : > { %v3778_v52 = vld [vmem:[#allocation2 + $0x4] sm:$0xff] }
 0x532   : > { %v3784_v54 = vld [vmem:[#allocation2 + $0x7] sm:$0xff] }
 0x533   : > { %v3774_v20 = vld [vmem:[#allocation2 + $0x3] sm:$0xff] }
 0x534   : > { %v3780_v55 = vld [vmem:[#allocation2 + $0x5] sm:$0xff] }
 0x535   : > { %v3779_v25 = vld [vmem:[#allocation2 + $0xc] sm:$0xff]  ;;  %v3797_v6 = vld [vmem:[#allocation2 + $0x14] sm:$0xff] }
 0x536   : > { %v3785_v59 = vld [vmem:[#allocation2 + $0xf] sm:$0xff]  ;;  %v3947_v63 = vpack.c.bf16 %v3779_v25, %v3778_v52  ;;  %v3953_v11 = vpack.c.bf16 %v3797_v6, %v3779_v25  ;;  %v6389_v25 = vld [vmem:[%s7808_s8 + $0x40] sm:$0xff]  }
 0x537   : > { %v7622_v60 = vld [vmem:[#allocation2 + $0xb] sm:$0xff]  ;;  %v5347_v0 = vpack.c.bf16 %v3785_v59, %v3784_v54  ;;  %v3794_v37 = vld [vmem:[#allocation2 + $0x13] sm:$0xff] }
 0x538   : > { %v5344_v1 = vpack.c.bf16 %v7622_v60, %v3774_v20  ;;  %v7625_v2 = vld [vmem:[#allocation2 + $0xd] sm:$0xff]  ;;  %4419 = vmatprep.mubr.bf16.mxu0 %v3947_v63  ;;  %v5356_v40 = vpack.c.bf16 %v3794_v37, %v7622_v60  ;;  %v3798_v50 = vld [vmem:[#allocation2 + $0x15] sm:$0xff] }
 0x539   : > { %v3790_v17 = vld [vmem:[#allocation2 + $0x9] sm:$0xff]  ;;  %v3791_v3 = vld [vmem:[#allocation2 + $0x11] sm:$0xff]  ;;  %v5350_v4 = vpack.c.bf16 %v7625_v2, %v3780_v55  ;;  %5348 = vmatprep.mubr.msk.bf16.mxu1 %vm6629_vm5, %v5347_v0  ;;  %v5359_v52 = vpack.c.bf16 %v3798_v50, %v7625_v2 }
 0x53a   : > { %5345 = vmatmul.mubr.msk.bf16.vlgmr.msra.gmra.mxu0 %vm6629_vm5, %v5344_v1  ;;  %v5353_v10 = vpack.c.bf16 %v3791_v3, %v3790_v17  ;;  %v6382_v54 = vld [vmem:[%s7808_s8 + $0x78] sm:$0xff]   ;;  %v6384_v20 = vld [vmem:[%s7808_s8 + $0x68] sm:$0xff]  }
 0x53b   : > { %5351 = vmatmul.mubr.msk.bf16.vlgmr.msra.gmra.mxu1 %vm6625_vm4, %v5350_v4  ;;  %5823 = vmatpush3.bf16.msra.mxu0 %v6344_v56  ;;  %v6386_v55 = vld [vmem:[%s7808_s8 + $0x58] sm:$0xff]   ;;  %v6387_v56 = vld [vmem:[%s7808_s8 + $0x50] sm:$0xff]  }
 0x53c   : > { %5845 = vmatpush3.bf16.msra.mxu1 %v6345_v57  ;;  %5354 = vmatprep.mubr.msk.bf16.mxu0 %vm6625_vm4, %v5353_v10  ;;  %v6388_v57 = vld [vmem:[%s7808_s8 + $0x48] sm:$0xff]  }
 0x53d   : > { %4542 = vmatprep.mubr.bf16.mxu1 %v3953_v11  ;;  %5824 = vmatprep.subr.bf16.mxu0 %v6346_v7 }
 0x53e   : > { %5846 = vmatprep.subr.bf16.mxu1 %v6347_v8 }
 0x53f   : > { %5825 = vmatpush3.bf16.msra.mxu0 %v6348_v12 }
 0x540   : > { %5847 = vmatpush3.bf16.msra.mxu1 %v6349_v13  ;;  %5826 = vmatprep.subr.bf16.mxu0 %v6350_v15 }
 0x541   : > { %5848 = vmatprep.subr.bf16.mxu1 %v6351_v21 }
 0x543   : > { %5827 = vmatpush3.bf16.msra.mxu0 %v6352_v22 }
 0x544   : > { %5849 = vmatpush3.bf16.msra.mxu1 %v6353_v23  ;;  %5828 = vmatprep.subr.bf16.mxu0 %v6354_v24 }
 0x545   : > { %5850 = vmatprep.subr.bf16.mxu1 %v6355_v26 }
 0x547   : > { %5829 = vmatpush3.bf16.msra.mxu0 %v6356_v27 }
 0x548   : > { %5851 = vmatpush3.bf16.msra.mxu1 %v6357_v51  ;;  %5830 = vmatprep.subr.bf16.mxu0 %v6358_v53 }
 0x549   : > { %5852 = vmatprep.subr.bf16.mxu1 %v6359_v58 }
 0x54b   : > { %5831 = vmatpush3.bf16.msra.mxu0 %v6360_v61 }
 0x54c   : > { %5853 = vmatpush3.bf16.msra.mxu1 %v6361_v5  ;;  %5832 = vmatprep.subr.bf16.mxu0 %v6362_v9 }
 0x54d   : > { %5854 = vmatprep.subr.bf16.mxu1 %v6363_v14 }
 0x54f   : > { %5833 = vmatpush3.bf16.msra.mxu0 %v6364_v16 }
 0x550   : > { %5855 = vmatpush3.bf16.msra.mxu1 %v6365_v28  ;;  %5834 = vmatprep.subr.bf16.mxu0 %v6366_v29 }
 0x551   : > { %5856 = vmatprep.subr.bf16.mxu1 %v6367_v30 }
 0x553   : > { %5835 = vmatpush3.bf16.msra.mxu0 %v6368_v31 }
 0x554   : > { %5857 = vmatpush3.bf16.msra.mxu1 %v6369_v32  ;;  %5836 = vmatprep.subr.bf16.mxu0 %v6370_v33 }
 0x555   : > { %5858 = vmatprep.subr.bf16.mxu1 %v6371_v34 }
 0x557   : > { %5837 = vmatpush3.bf16.msra.mxu0 %v6372_v35 }
 0x558   : > { %5859 = vmatpush3.bf16.msra.mxu1 %v6373_v36  ;;  %5968 = vmatprep.subr.bf16.mxu0 %v7167_v62 }
 0x559   : > { %5988 = vmatprep.subr.bf16.mxu1 %v7167_v62 }
 0x55a   : > { %4502 = vmatmul.mubr.bf16.vlgmr.msra.gmra.mxu0 %v3950_v39 }
 0x55b   : > { %5357 = vmatmul.mubr.msk.bf16.vlgmr.msra.gmra.mxu1 %vm6629_vm5, %v5356_v40  ;;  %5969 = vmatpush3.bf16.msra.mxu0 %v6374_v38 }
 0x55c   : > { %5984 = vmatprep.mubr.msk.bf16.mxu0 %vm6401_vm6, %v7167_v62  ;;  %5970 = vmatprep.subr.bf16.mxu0 %v7167_v62 }
 0x55d   : > { %6004 = vmatprep.mubr.msk.bf16.mxu1 %vm6401_vm6, %v7167_v62  ;;  %5989 = vmatpush3.bf16.msra.mxu1 %v6382_v54 }
 0x55e   : > { %5990 = vmatprep.subr.bf16.mxu1 %v6391_v49 }
 0x55f   : > { %5971 = vmatpush3.bf16.msra.mxu0 %v6375_v41 }
 0x560   : > { %5972 = vmatprep.subr.bf16.mxu0 %v7167_v62 }
 0x563   : > { %5973 = vmatpush3.bf16.msra.mxu0 %v6376_v42 }
 0x564   : > { %5974 = vmatprep.subr.bf16.mxu0 %v7167_v62 }
 0x567   : > { %5975 = vmatpush3.bf16.msra.mxu0 %v6377_v19 }
 0x568   : > { %5976 = vmatprep.subr.bf16.mxu0 %v7167_v62 }
 0x56b   : > { %5977 = vmatpush3.bf16.msra.mxu0 %v6378_v43 }
 0x56c   : > { %5978 = vmatprep.subr.bf16.mxu0 %v7167_v62 }
 0x56f   : > { %5979 = vmatpush3.bf16.msra.mxu0 %v6379_v45 }
 0x570   : > { %5980 = vmatprep.subr.bf16.mxu0 %v7167_v62  ;;  %v6383_v62 = vld [vmem:[%s7808_s8 + $0x70] sm:$0xff]  }
 0x571   : > { %5991 = vmatpush3.bf16.msra.mxu1 %v6383_v62 }
 0x572   : > { %5992 = vmatprep.subr.bf16.mxu1 %v6391_v49 }
 0x573   : > { %5981 = vmatpush3.bf16.msra.mxu0 %v6380_v46 }
 0x574   : > { %5982 = vmatprep.subr.bf16.mxu0 %v6391_v49 }
 0x575   : > { %5993 = vmatpush3.bf16.msra.mxu1 %v6384_v20 }
 0x576   : > { %5994 = vmatprep.subr.bf16.mxu1 %v6391_v49 }
 0x577   : > { %5983 = vmatpush3.bf16.msra.mxu0 %v6381_v47 }
 0x579   : > { %5995 = vmatpush3.bf16.msra.mxu1 %v6385_v18 }
 0x57a   : > { %5985 = vmatmul.mubr.msk.bf16.vlgmr.msra.gmra.mxu0 %vm6625_vm4, %v5359_v52  ;;  %5996 = vmatprep.subr.bf16.mxu1 %v6391_v49 }
 0x57d   : > { %5997 = vmatpush3.bf16.msra.mxu1 %v6386_v55 }
 0x57e   : > { %5998 = vmatprep.subr.bf16.mxu1 %v6391_v49 }
 0x581   : > { %5999 = vmatpush3.bf16.msra.mxu1 %v6387_v56 }
 0x582   : > { %6000 = vmatprep.subr.bf16.mxu1 %v6391_v49 }
 0x585   : > { %6001 = vmatpush3.bf16.msra.mxu1 %v6388_v57 }
 0x586   : > { %6002 = vmatprep.subr.bf16.mxu1 %v6391_v49 }
 0x589   : > { %6003 = vmatpush3.bf16.msra.mxu1 %v6389_v25 }
 0x5fa   : > { %v5794_v59 = vpop.f32.mrf.mxu0 }
 0x5fb   : > { %v5816_v63 = vpop.f32.mrf.mxu1 }
 0x5fc   : > { %v5795_v60 = vpop.f32.mrf.mxu0 }
 0x5fd   : > { %v5817_v1 = vpop.f32.mrf.mxu1  ;;  %v5796_v11 = vadd.f32 %v5795_v60, %v5794_v59 }
 0x5fe   : > { %v5797_v0 = vpop.f32.mrf.mxu0  ;;  %v5818_v12 = vadd.f32 %v5817_v1, %v5816_v63 }
 0x5ff   : > { %v5819_v17 = vpop.f32.mrf.mxu1 }
 0x600   : > { %v5798_v2 = vpop.f32.mrf.mxu0  ;;  %v4463_v24 = vadd.f32 %v5818_v12, %v5796_v11 }
 0x601   : > { %v5820_v4 = vpop.f32.mrf.mxu1  ;;  %v5799_v15 = vadd.f32 %v5798_v2, %v5797_v0 }
 0x602   : > { %v5821_v21 = vadd.f32 %v5820_v4, %v5819_v17 }
 0x604   : > { %v4466_v27 = vadd.f32 %v5821_v21, %v5799_v15 }
 0x61a   : > { %v5838_v3 = vpop.f32.mrf.mxu0 }
 0x61b   : > { %v5860_v7 = vpop.f32.mrf.mxu1 }
 0x61c   : > { %v5839_v6 = vpop.f32.mrf.mxu0 }
 0x61d   : > { %v5861_v10 = vpop.f32.mrf.mxu1  ;;  %v5840_v22 = vadd.f32 %v5839_v6, %v5838_v3 }
 0x61e   : > { %v5841_v8 = vpop.f32.mrf.mxu0  ;;  %v5862_v58 = vadd.f32 %v5861_v10, %v5860_v7 }
 0x61f   : > { %v5863_v23 = vpop.f32.mrf.mxu1  ;;  %v4504_v51 = vadd.f32 %v5840_v22, %v4463_v24 }
 0x620   : > { %v5842_v13 = vpop.f32.mrf.mxu0 }
 0x621   : > { %v5843_v26 = vadd.f32 %v5842_v13, %v5841_v8  ;;  %v5864_v53 = vpop.f32.mrf.mxu1  ;;  %v4545_v14 = vadd.f32 %v5862_v58, %v4504_v51 }
 0x622   : > { %v5865_v9 = vadd.f32 %v5864_v53, %v5863_v23 }
 0x623   : > { %v4507_v61 = vadd.f32 %v5843_v26, %v4466_v27 }
 0x625   : > { %v4548_v29 = vadd.f32 %v5865_v9, %v4507_v61 }
 0x63a   : > { %v4585_v5 = vpop.f32.mrf.mxu0 }
 0x63b   : > { %v4586_v28 = vadd.f32 %v4585_v5, %v4545_v14 }
 0x63c   : > { %v5986_v16 = vpop.f32.mrf.mxu0 }
 0x63d   : > { %v4592_v33 = vmax.f32 %v4586_v28, 0.0 }
 0x63e   : > { %v4588_v30 = vpop.f32.mrf.mxu0 }
 0x63f   : > { %v4589_v31 = vadd.f32 %v4588_v30, %v4548_v29 }
 0x640   : > { %v5987_v32 = vpop.f32.mrf.mxu0 }
 0x641   : > { %v4593_v34 = vmax.f32 %v4589_v31, 0.0 }
 0x643   : > { %v4611_v35 = vpack.c.bf16 %v4593_v34, %v4592_v33 }
 0x645   : > { %6005 = vmatmul.mubr.bf16.vlgmr.msra.gmra.mxu1 %v4611_v35 }
 0x705   : > { %v4694_v36 = vpop.f32.mrf.mxu1 }
 0x706   : > { %v4701_v37 = vadd.f32 %v4694_v36, %v7605_v44 }
 0x707   : > { %v6006_v38 = vpop.f32.mrf.mxu1 }
 0x708   : > { %v4703_v39 = vmax.f32 %v4701_v37, 0.0 }
 0x709   : > { %v4697_v40 = vpop.f32.mrf.mxu1 }
 0x70a   : > { %4705 = vst [vmem:[%s334_s22] sm:$0xff] %v4703_v39  ;;  %v4702_v41 = vadd.f32 %v4697_v40, %v7611_v48 }
 0x70b   : > { %v6007_v42 = vpop.f32.mrf.mxu1 }
 0x70c   : > { %v4704_v19 = vmax.f32 %v4702_v41, 0.0 }
 0x70e   : > { %4706 = vst [vmem:[%s334_s22 + $0x8] sm:$0xff] %v4704_v19 }
 0x70f PF: > { %s19_s30 = sadd.s32 1, %s6398_s30  }
 0x710   : > { %p16_p5 = scmp.ge.s32.totalorder %s19_s30, 4  }
 0x712   :  { %18 = sbr.rel (!%p16_p5) target bundleno = 1 (0x1), region = 88 }

</bundles_post_ra>
